<compile_context>
chip_gen: v7x
topology: tpu7x:2x2x1
jax: 0.10.0
libtpu: 0.0.40
codegen_flags: <defaults>
</compile_context>

<pallas_src>
import numpy as np

import jax
import jax.numpy as jnp
from jax.experimental import pallas as pl
from jax.experimental.pallas import tpu as pltpu


def _round_up(x, m):
    return (x + m - 1) // m * m


def _pick_bblk(N, HW, max_lanes=4096, min_lanes=1024):
    """Images packed along lanes per grid step (must divide N)."""
    cap = max(1, max_lanes // HW)
    divs = [b for b in range(1, N + 1) if N % b == 0 and b <= cap]
    # Prefer >=2 grid steps (v7x megacore) as long as each step still has
    # enough lanes to amortize per-step overhead.
    pref = [b for b in divs if N // b >= 2 and b * HW >= min_lanes]
    return max(pref) if pref else max(divs)


# -----------------------------------------------------------------------------
# Fused RDB kernel
# -----------------------------------------------------------------------------
def _make_rdb_kernel(C0p, Gp, num_layers, Ctot_pad, BHW, offsets):
    L = num_layers
    CENTER = offsets.index(0)  # tap (0, 0)

    def kernel(*refs):
        # refs = (x, masks, w0, b0, ..., w_{L-1}, b_{L-1}, lff_w, lff_b, o, cache)
        x_ref = refs[0]                       # (1, C0p, BHW)
        m_ref = refs[1]                       # (9, BHW)
        lff_w_ref = refs[2 + 2 * L]           # (C0p, Ctot_pad)
        lff_b_ref = refs[3 + 2 * L]           # (C0p, 1)
        o_ref = refs[4 + 2 * L]               # (1, C0p, BHW)
        cache = refs[5 + 2 * L]               # VMEM (9*Ctot_pad, BHW) f32

        x = x_ref[0].astype(jnp.float32)      # (C0p, BHW); pad rows already 0

        masks = [m_ref[pl.ds(t, 1), :] for t in range(9)]   # (1, BHW) each

        # ---- fill tap cache with the (channel-padded) input block ----------
        for t, off in enumerate(offsets):
            base = t * Ctot_pad
            if off == 0:
                cache[pl.ds(base, C0p), :] = x
            else:
                # shifted[p] = x[p + off]; lanes whose neighbor falls outside
                # its own image are zeroed by the mask (== SAME zero padding).
                cache[pl.ds(base, C0p), :] = jnp.roll(x, -off, axis=1) * masks[t]

        # ---- dense layers: 3x3 conv + bias + ReLU, appended incrementally ---
        for i in range(L):
            k_rows = C0p + i * Gp              # padded in-channel rows
            w_ref = refs[2 + 2 * i]            # (9, Gp, k_rows)
            b_ref = refs[3 + 2 * i]            # (Gp, 1)

            acc = None
            for t in range(9):                 # 9 per-tap dots, no concat
                part = jax.lax.dot_general(
                    w_ref[t], cache[pl.ds(t * Ctot_pad, k_rows), :],
                    dimension_numbers=(((1,), (0,)), ((), ())),
                    preferred_element_type=jnp.float32)
                acc = part if acc is None else acc + part
            y = jnp.maximum(acc + b_ref[...], 0.0)    # (Gp, BHW); pad rows -> 0

            row0 = C0p + i * Gp
            cache[pl.ds(CENTER * Ctot_pad + row0, Gp), :] = y
            if i < L - 1:                      # shifted taps only if still needed
                for t, off in enumerate(offsets):
                    if off == 0:
                        continue
                    cache[pl.ds(t * Ctot_pad + row0, Gp), :] = (
                        jnp.roll(y, -off, axis=1) * masks[t])

        # ---- 1x1 local feature fusion + residual ----------------------------
        feat = cache[pl.ds(CENTER * Ctot_pad, Ctot_pad), :]   # unshifted features
        y = jax.lax.dot_general(
            lff_w_ref[...], feat,
            dimension_numbers=(((1,), (0,)), ((), ())),
            preferred_element_type=jnp.float32)
        o_ref[0] = (y + lff_b_ref[...] + x).astype(o_ref.dtype)

    return kernel


def build_rdb_forward(in_channels, channel_growth, num_layers, H, W):
    C0, G, L = in_channels, channel_growth, num_layers
    C0p, Gp = _round_up(C0, 8), _round_up(G, 8)
    Ctot_pad = C0p + L * Gp
    HW = H * W

    # host-precomputed tap offsets and per-pixel validity masks
    offsets = []
    hh = np.arange(HW) // W
    ww = np.arange(HW) % W
    mask_np = np.zeros((9, HW), np.float32)
    t = 0
    for dh in (-1, 0, 1):
        for dw in (-1, 0, 1):
            offsets.append(dh * W + dw)
            valid = ((hh + dh >= 0) & (hh + dh < H) &
                     (ww + dw >= 0) & (ww + dw < W))
            mask_np[t] = valid.astype(np.float32)
            t += 1

    def forward(x_nchw, dense_w, dense_b, lff_w, lff_b):
        N = x_nchw.shape[0]
        bb = _pick_bblk(N, HW)
        steps = N // bb
        BHW = bb * HW

        # channel-pad to C0p (zero rows) and lane-stack bb images per grid step
        xp = jnp.pad(x_nchw, ((0, 0), (0, C0p - C0), (0, 0), (0, 0)))
        xg = (xp.reshape(steps, bb, C0p, HW)
                .transpose(0, 2, 1, 3)
                .reshape(steps, C0p, BHW))
        masks = jnp.asarray(np.tile(mask_np, (1, bb)))        # (9, BHW)

        in_specs = [
            pl.BlockSpec((1, C0p, BHW), lambda g: (g, 0, 0)),
            pl.BlockSpec((9, BHW), lambda g: (0, 0)),          # DMA'd once
        ]
        inputs = [xg, masks]
        for i in range(L):
            k_rows = C0p + i * Gp
            in_specs.append(pl.BlockSpec((9, Gp, k_rows), lambda g: (0, 0, 0)))
            in_specs.append(pl.BlockSpec((Gp, 1), lambda g: (0, 0)))
            inputs.append(dense_w[i])
            inputs.append(dense_b[i])
        in_specs.append(pl.BlockSpec((C0p, Ctot_pad), lambda g: (0, 0)))
        in_specs.append(pl.BlockSpec((C0p, 1), lambda g: (0, 0)))
        inputs.extend([lff_w, lff_b])

        kernel = _make_rdb_kernel(C0p, Gp, L, Ctot_pad, BHW, offsets)
        out = pl.pallas_call(
            kernel,
            out_shape=jax.ShapeDtypeStruct((steps, C0p, BHW), x_nchw.dtype),
            grid=(steps,),
            in_specs=in_specs,
            out_specs=pl.BlockSpec((1, C0p, BHW), lambda g: (g, 0, 0)),
            scratch_shapes=[pltpu.VMEM((9 * Ctot_pad, BHW), jnp.float32)],
            compiler_params=pltpu.CompilerParams(
                dimension_semantics=("parallel",)),
        )(*inputs)

        out = out.reshape(steps, C0p, bb, H, W)[:, :C0]
        return out.transpose(0, 2, 1, 3, 4).reshape(N, C0, H, W)

    return jax.jit(forward)


# -----------------------------------------------------------------------------
# Parameters: raw (reference) layout + kernel layout preparation
# -----------------------------------------------------------------------------
def init_rdb_params(key, in_channels, channel_growth, num_layers):
    """HWIO conv weights + biases (reference layout)."""
    params = {"dense": [], "lff_w": None, "lff_b": None}
    for i in range(num_layers):
        cin = in_channels + channel_growth * i
        key, kw, kb = jax.random.split(key, 3)
        bound = 1.0 / np.sqrt(cin * 9)
        w = jax.random.uniform(kw, (3, 3, cin, channel_growth),
                               jnp.float32, -bound, bound)
        b = jax.random.uniform(kb, (channel_growth,), jnp.float32, -bound, bound)
        params["dense"].append((w, b))
    ctot = in_channels + channel_growth * num_layers
    key, kw, kb = jax.random.split(key, 3)
    bound = 1.0 / np.sqrt(ctot)
    params["lff_w"] = jax.random.uniform(kw, (ctot, in_channels),
                                         jnp.float32, -bound, bound)
    params["lff_b"] = jax.random.uniform(kb, (in_channels,),
                                         jnp.float32, -bound, bound)
    return params


def prepare_kernel_params(params, in_channels, channel_growth, num_layers):
    """Repack weights into the padded, per-tap matmul layout used by the kernel."""
    C0, G, L = in_channels, channel_growth, num_layers
    C0p, Gp = _round_up(C0, 8), _round_up(G, 8)
    Ctot_pad = C0p + L * Gp

    def padded_row(c):               # real channel index -> padded cache row
        if c < C0:
            return c
        j, g = divmod(c - C0, G)
        return C0p + j * Gp + g

    dense_w, dense_b = [], []
    for i, (w, b) in enumerate(params["dense"]):
        cin = C0 + G * i
        k_rows = C0p + i * Gp
        rows = np.array([padded_row(c) for c in range(cin)])
        w_pad = np.zeros((3, 3, k_rows, Gp), np.float32)
        w_pad[:, :, rows, :G] = np.asarray(w)
        wt = np.ascontiguousarray(
            w_pad.reshape(9, k_rows, Gp).transpose(0, 2, 1))   # (9, Gp, k_rows)
        b_pad = np.zeros((Gp, 1), np.float32)
        b_pad[:G, 0] = np.asarray(b)
        dense_w.append(jnp.asarray(wt))
        dense_b.append(jnp.asarray(b_pad))

    ctot = C0 + G * L
    rows = np.array([padded_row(c) for c in range(ctot)])
    lff_pack = np.zeros((C0p, Ctot_pad), np.float32)
    lff_pack[:C0, rows] = np.asarray(params["lff_w"]).T        # (C0, ctot)
    lff_b = np.zeros((C0p, 1), np.float32)
    lff_b[:C0, 0] = np.asarray(params["lff_b"])
    return tuple(dense_w), tuple(dense_b), jnp.asarray(lff_pack), jnp.asarray(lff_b)


# -----------------------------------------------------------------------------
# Pure-JAX reference
# -----------------------------------------------------------------------------
def rdb_reference(x_nchw, params):
    x = jnp.transpose(x_nchw, (0, 2, 3, 1))
    feat = x
    for (w, b) in params["dense"]:
        y = jax.lax.conv_general_dilated(
            feat, w, window_strides=(1, 1), padding="SAME",
            dimension_numbers=("NHWC", "HWIO", "NHWC"))
        feat = jnp.concatenate([feat, jnp.maximum(y + b, 0.0)], axis=-1)
    y = jnp.einsum("nhwc,co->nhwo", feat, params["lff_w"]) + params["lff_b"]
    return jnp.transpose(x + y, (0, 3, 1, 2))


if __name__ == "__main__":
    in_channels, channel_growth, num_layers = 4, 4, 3
    N, H, W = 2, 16, 16

    key = jax.random.PRNGKey(0)
    key, kx = jax.random.split(key)
    x = jax.random.normal(kx, (N, in_channels, H, W), jnp.float32)

    params = init_rdb_params(key, in_channels, channel_growth, num_layers)
    kparams = prepare_kernel_params(params, in_channels, channel_growth,
                                    num_layers)

    rdb_forward = build_rdb_forward(in_channels, channel_growth, num_layers,
                                    H, W)
    out = jax.block_until_ready(rdb_forward(x, *kparams))

    ref = jax.block_until_ready(rdb_reference(x, params))
    assert out.shape == (N, in_channels, H, W), out.shape
    assert jnp.allclose(out, ref, atol=1e-4, rtol=1e-4), \
        float(jnp.max(jnp.abs(out - ref)))

    print("KERNEL_OK")
</pallas_src>

<mosaic_0001>
module attributes {stable_mosaic.version = 11 : i64} {
  func.func @kernel(%arg0: i32, %arg1: memref<1x8x512xf32, #tpu.memory_space<vmem>>, %arg2: memref<9x512xf32, #tpu.memory_space<vmem>>, %arg3: memref<9x8x8xf32, #tpu.memory_space<vmem>>, %arg4: memref<8x1xf32, #tpu.memory_space<vmem>>, %arg5: memref<9x8x16xf32, #tpu.memory_space<vmem>>, %arg6: memref<8x1xf32, #tpu.memory_space<vmem>>, %arg7: memref<9x8x24xf32, #tpu.memory_space<vmem>>, %arg8: memref<8x1xf32, #tpu.memory_space<vmem>>, %arg9: memref<8x32xf32, #tpu.memory_space<vmem>>, %arg10: memref<8x1xf32, #tpu.memory_space<vmem>>, %arg11: memref<1x8x512xf32, #tpu.memory_space<vmem>>, %arg12: memref<288x512xf32, #tpu.memory_space<vmem>>) attributes {dimension_semantics = [#tpu.dimension_semantics<parallel>], iteration_bounds = array<i64: 1>, scalar_prefetch = 0 : i64, scratch_operands = 1 : i64, tpu.core_type = #tpu.core_type<tc>, window_params = [{transform_indices = @transform_0, window_bounds = array<i64: 1, 8, 512>}, {pipeline_mode = #tpu.pipeline_mode<synchronous>, transform_indices = @transform_1, window_bounds = array<i64: 9, 512>}, {pipeline_mode = #tpu.pipeline_mode<synchronous>, transform_indices = @transform_2, window_bounds = array<i64: 9, 8, 8>}, {pipeline_mode = #tpu.pipeline_mode<synchronous>, transform_indices = @transform_3, window_bounds = array<i64: 8, 1>}, {pipeline_mode = #tpu.pipeline_mode<synchronous>, transform_indices = @transform_4, window_bounds = array<i64: 9, 8, 16>}, {pipeline_mode = #tpu.pipeline_mode<synchronous>, transform_indices = @transform_5, window_bounds = array<i64: 8, 1>}, {pipeline_mode = #tpu.pipeline_mode<synchronous>, transform_indices = @transform_6, window_bounds = array<i64: 9, 8, 24>}, {pipeline_mode = #tpu.pipeline_mode<synchronous>, transform_indices = @transform_7, window_bounds = array<i64: 8, 1>}, {pipeline_mode = #tpu.pipeline_mode<synchronous>, transform_indices = @transform_8, window_bounds = array<i64: 8, 32>}, {pipeline_mode = #tpu.pipeline_mode<synchronous>, transform_indices = @transform_9, window_bounds = array<i64: 8, 1>}, {transform_indices = @transform_10, window_bounds = array<i64: 1, 8, 512>}]} {
    %c0 = arith.constant 0 : index
    %c0_0 = arith.constant 0 : index
    %c0_1 = arith.constant 0 : index
    %0 = vector.load %arg1[%c0, %c0_0, %c0_1] : memref<1x8x512xf32, #tpu.memory_space<vmem>>, vector<1x8x512xf32>
    %1 = vector.shape_cast %0 : vector<1x8x512xf32> to vector<8x512xf32>
    %c0_2 = arith.constant 0 : index
    %c0_3 = arith.constant 0 : index
    %2 = vector.load %arg2[%c0_2, %c0_3] : memref<9x512xf32, #tpu.memory_space<vmem>>, vector<1x512xf32>
    %c1 = arith.constant 1 : index
    %c0_4 = arith.constant 0 : index
    %3 = vector.load %arg2[%c1, %c0_4] : memref<9x512xf32, #tpu.memory_space<vmem>>, vector<1x512xf32>
    %c2 = arith.constant 2 : index
    %c0_5 = arith.constant 0 : index
    %4 = vector.load %arg2[%c2, %c0_5] : memref<9x512xf32, #tpu.memory_space<vmem>>, vector<1x512xf32>
    %c3 = arith.constant 3 : index
    %c0_6 = arith.constant 0 : index
    %5 = vector.load %arg2[%c3, %c0_6] : memref<9x512xf32, #tpu.memory_space<vmem>>, vector<1x512xf32>
    %c5 = arith.constant 5 : index
    %c0_7 = arith.constant 0 : index
    %6 = vector.load %arg2[%c5, %c0_7] : memref<9x512xf32, #tpu.memory_space<vmem>>, vector<1x512xf32>
    %c6 = arith.constant 6 : index
    %c0_8 = arith.constant 0 : index
    %7 = vector.load %arg2[%c6, %c0_8] : memref<9x512xf32, #tpu.memory_space<vmem>>, vector<1x512xf32>
    %c7 = arith.constant 7 : index
    %c0_9 = arith.constant 0 : index
    %8 = vector.load %arg2[%c7, %c0_9] : memref<9x512xf32, #tpu.memory_space<vmem>>, vector<1x512xf32>
    %c8 = arith.constant 8 : index
    %c0_10 = arith.constant 0 : index
    %9 = vector.load %arg2[%c8, %c0_10] : memref<9x512xf32, #tpu.memory_space<vmem>>, vector<1x512xf32>
    %10 = vector.extract_strided_slice %1 {offsets = [0, 495], sizes = [8, 17], strides = [1, 1]} : vector<8x512xf32> to vector<8x17xf32>
    %11 = vector.extract_strided_slice %1 {offsets = [0, 0], sizes = [8, 495], strides = [1, 1]} : vector<8x512xf32> to vector<8x495xf32>
    %12 = tpu.concatenate %10, %11 in 1 : vector<8x17xf32>, vector<8x495xf32> -> vector<8x512xf32>
    %13 = vector.broadcast %2 : vector<1x512xf32> to vector<8x512xf32>
    %14 = arith.mulf %12, %13 : vector<8x512xf32>
    %c0_11 = arith.constant 0 : index
    %c0_12 = arith.constant 0 : index
    %15 = vector.load %arg12[%c0_11, %c0_12] : memref<288x512xf32, #tpu.memory_space<vmem>>, vector<8x512xf32>
    tpu.vector_store %arg12[%c0_11, %c0_12], %14 {strides = array<i32>} : memref<288x512xf32, #tpu.memory_space<vmem>>, vector<8x512xf32>,
    %16 = vector.extract_strided_slice %1 {offsets = [0, 496], sizes = [8, 16], strides = [1, 1]} : vector<8x512xf32> to vector<8x16xf32>
    %17 = vector.extract_strided_slice %1 {offsets = [0, 0], sizes = [8, 496], strides = [1, 1]} : vector<8x512xf32> to vector<8x496xf32>
    %18 = tpu.concatenate %16, %17 in 1 : vector<8x16xf32>, vector<8x496xf32> -> vector<8x512xf32>
    %19 = vector.broadcast %3 : vector<1x512xf32> to vector<8x512xf32>
    %20 = arith.mulf %18, %19 : vector<8x512xf32>
    %c32 = arith.constant 32 : index
    %c0_13 = arith.constant 0 : index
    %21 = vector.load %arg12[%c32, %c0_13] : memref<288x512xf32, #tpu.memory_space<vmem>>, vector<8x512xf32>
    tpu.vector_store %arg12[%c32, %c0_13], %20 {strides = array<i32>} : memref<288x512xf32, #tpu.memory_space<vmem>>, vector<8x512xf32>,
    %22 = vector.extract_strided_slice %1 {offsets = [0, 497], sizes = [8, 15], strides = [1, 1]} : vector<8x512xf32> to vector<8x15xf32>
    %23 = vector.extract_strided_slice %1 {offsets = [0, 0], sizes = [8, 497], strides = [1, 1]} : vector<8x512xf32> to vector<8x497xf32>
    %24 = tpu.concatenate %22, %23 in 1 : vector<8x15xf32>, vector<8x497xf32> -> vector<8x512xf32>
    %25 = vector.broadcast %4 : vector<1x512xf32> to vector<8x512xf32>
    %26 = arith.mulf %24, %25 : vector<8x512xf32>
    %c64 = arith.constant 64 : index
    %c0_14 = arith.constant 0 : index
    %27 = vector.load %arg12[%c64, %c0_14] : memref<288x512xf32, #tpu.memory_space<vmem>>, vector<8x512xf32>
    tpu.vector_store %arg12[%c64, %c0_14], %26 {strides = array<i32>} : memref<288x512xf32, #tpu.memory_space<vmem>>, vector<8x512xf32>,
    %28 = vector.extract_strided_slice %1 {offsets = [0, 511], sizes = [8, 1], strides = [1, 1]} : vector<8x512xf32> to vector<8x1xf32>
    %29 = vector.extract_strided_slice %1 {offsets = [0, 0], sizes = [8, 511], strides = [1, 1]} : vector<8x512xf32> to vector<8x511xf32>
    %30 = tpu.concatenate %28, %29 in 1 : vector<8x1xf32>, vector<8x511xf32> -> vector<8x512xf32>
    %31 = vector.broadcast %5 : vector<1x512xf32> to vector<8x512xf32>
    %32 = arith.mulf %30, %31 : vector<8x512xf32>
    %c96 = arith.constant 96 : index
    %c0_15 = arith.constant 0 : index
    %33 = vector.load %arg12[%c96, %c0_15] : memref<288x512xf32, #tpu.memory_space<vmem>>, vector<8x512xf32>
    tpu.vector_store %arg12[%c96, %c0_15], %32 {strides = array<i32>} : memref<288x512xf32, #tpu.memory_space<vmem>>, vector<8x512xf32>,
    %c128 = arith.constant 128 : index
    %c0_16 = arith.constant 0 : index
    %34 = vector.load %arg12[%c128, %c0_16] : memref<288x512xf32, #tpu.memory_space<vmem>>, vector<8x512xf32>
    tpu.vector_store %arg12[%c128, %c0_16], %1 {strides = array<i32>} : memref<288x512xf32, #tpu.memory_space<vmem>>, vector<8x512xf32>,
    %35 = vector.extract_strided_slice %1 {offsets = [0, 1], sizes = [8, 511], strides = [1, 1]} : vector<8x512xf32> to vector<8x511xf32>
    %36 = vector.extract_strided_slice %1 {offsets = [0, 0], sizes = [8, 1], strides = [1, 1]} : vector<8x512xf32> to vector<8x1xf32>
    %37 = tpu.concatenate %35, %36 in 1 : vector<8x511xf32>, vector<8x1xf32> -> vector<8x512xf32>
    %38 = vector.broadcast %6 : vector<1x512xf32> to vector<8x512xf32>
    %39 = arith.mulf %37, %38 : vector<8x512xf32>
    %c160 = arith.constant 160 : index
    %c0_17 = arith.constant 0 : index
    %40 = vector.load %arg12[%c160, %c0_17] : memref<288x512xf32, #tpu.memory_space<vmem>>, vector<8x512xf32>
    tpu.vector_store %arg12[%c160, %c0_17], %39 {strides = array<i32>} : memref<288x512xf32, #tpu.memory_space<vmem>>, vector<8x512xf32>,
    %41 = vector.extract_strided_slice %1 {offsets = [0, 15], sizes = [8, 497], strides = [1, 1]} : vector<8x512xf32> to vector<8x497xf32>
    %42 = vector.extract_strided_slice %1 {offsets = [0, 0], sizes = [8, 15], strides = [1, 1]} : vector<8x512xf32> to vector<8x15xf32>
    %43 = tpu.concatenate %41, %42 in 1 : vector<8x497xf32>, vector<8x15xf32> -> vector<8x512xf32>
    %44 = vector.broadcast %7 : vector<1x512xf32> to vector<8x512xf32>
    %45 = arith.mulf %43, %44 : vector<8x512xf32>
    %c192 = arith.constant 192 : index
    %c0_18 = arith.constant 0 : index
    %46 = vector.load %arg12[%c192, %c0_18] : memref<288x512xf32, #tpu.memory_space<vmem>>, vector<8x512xf32>
    tpu.vector_store %arg12[%c192, %c0_18], %45 {strides = array<i32>} : memref<288x512xf32, #tpu.memory_space<vmem>>, vector<8x512xf32>,
    %47 = vector.extract_strided_slice %1 {offsets = [0, 16], sizes = [8, 496], strides = [1, 1]} : vector<8x512xf32> to vector<8x496xf32>
    %48 = vector.extract_strided_slice %1 {offsets = [0, 0], sizes = [8, 16], strides = [1, 1]} : vector<8x512xf32> to vector<8x16xf32>
    %49 = tpu.concatenate %47, %48 in 1 : vector<8x496xf32>, vector<8x16xf32> -> vector<8x512xf32>
    %50 = vector.broadcast %8 : vector<1x512xf32> to vector<8x512xf32>
    %51 = arith.mulf %49, %50 : vector<8x512xf32>
    %c224 = arith.constant 224 : index
    %c0_19 = arith.constant 0 : index
    %52 = vector.load %arg12[%c224, %c0_19] : memref<288x512xf32, #tpu.memory_space<vmem>>, vector<8x512xf32>
    tpu.vector_store %arg12[%c224, %c0_19], %51 {strides = array<i32>} : memref<288x512xf32, #tpu.memory_space<vmem>>, vector<8x512xf32>,
    %53 = vector.extract_strided_slice %1 {offsets = [0, 17], sizes = [8, 495], strides = [1, 1]} : vector<8x512xf32> to vector<8x495xf32>
    %54 = vector.extract_strided_slice %1 {offsets = [0, 0], sizes = [8, 17], strides = [1, 1]} : vector<8x512xf32> to vector<8x17xf32>
    %55 = tpu.concatenate %53, %54 in 1 : vector<8x495xf32>, vector<8x17xf32> -> vector<8x512xf32>
    %56 = vector.broadcast %9 : vector<1x512xf32> to vector<8x512xf32>
    %57 = arith.mulf %55, %56 : vector<8x512xf32>
    %c256 = arith.constant 256 : index
    %c0_20 = arith.constant 0 : index
    %58 = vector.load %arg12[%c256, %c0_20] : memref<288x512xf32, #tpu.memory_space<vmem>>, vector<8x512xf32>
    tpu.vector_store %arg12[%c256, %c0_20], %57 {strides = array<i32>} : memref<288x512xf32, #tpu.memory_space<vmem>>, vector<8x512xf32>,
    %c0_21 = arith.constant 0 : index
    %c0_22 = arith.constant 0 : index
    %c0_23 = arith.constant 0 : index
    %59 = vector.load %arg3[%c0_21, %c0_22, %c0_23] : memref<9x8x8xf32, #tpu.memory_space<vmem>>, vector<1x8x8xf32>
    %60 = vector.shape_cast %59 : vector<1x8x8xf32> to vector<8x8xf32>
    %c0_24 = arith.constant 0 : index
    %c0_25 = arith.constant 0 : index
    %61 = vector.load %arg12[%c0_24, %c0_25] : memref<288x512xf32, #tpu.memory_space<vmem>>, vector<8x512xf32>
    %cst = arith.constant dense<0.000000e+00> : vector<8x512xf32>
    %62 = tpu.matmul %60, %61, %cst {dimension_numbers = #tpu.dot_dimension_numbers<[1], [0], [0], [1], [0, 0, 1, 1], [], []>} : vector<8x8xf32>, vector<8x512xf32>, vector<8x512xf32> -> vector<8x512xf32>
    %c1_26 = arith.constant 1 : index
    %c0_27 = arith.constant 0 : index
    %c0_28 = arith.constant 0 : index
    %63 = vector.load %arg3[%c1_26, %c0_27, %c0_28] : memref<9x8x8xf32, #tpu.memory_space<vmem>>, vector<1x8x8xf32>
    %64 = vector.shape_cast %63 : vector<1x8x8xf32> to vector<8x8xf32>
    %c32_29 = arith.constant 32 : index
    %c0_30 = arith.constant 0 : index
    %65 = vector.load %arg12[%c32_29, %c0_30] : memref<288x512xf32, #tpu.memory_space<vmem>>, vector<8x512xf32>
    %cst_31 = arith.constant dense<0.000000e+00> : vector<8x512xf32>
    %66 = tpu.matmul %64, %65, %cst_31 {dimension_numbers = #tpu.dot_dimension_numbers<[1], [0], [0], [1], [0, 0, 1, 1], [], []>} : vector<8x8xf32>, vector<8x512xf32>, vector<8x512xf32> -> vector<8x512xf32>
    %67 = arith.addf %62, %66 : vector<8x512xf32>
    %c2_32 = arith.constant 2 : index
    %c0_33 = arith.constant 0 : index
    %c0_34 = arith.constant 0 : index
    %68 = vector.load %arg3[%c2_32, %c0_33, %c0_34] : memref<9x8x8xf32, #tpu.memory_space<vmem>>, vector<1x8x8xf32>
    %69 = vector.shape_cast %68 : vector<1x8x8xf32> to vector<8x8xf32>
    %c64_35 = arith.constant 64 : index
    %c0_36 = arith.constant 0 : index
    %70 = vector.load %arg12[%c64_35, %c0_36] : memref<288x512xf32, #tpu.memory_space<vmem>>, vector<8x512xf32>
    %cst_37 = arith.constant dense<0.000000e+00> : vector<8x512xf32>
    %71 = tpu.matmul %69, %70, %cst_37 {dimension_numbers = #tpu.dot_dimension_numbers<[1], [0], [0], [1], [0, 0, 1, 1], [], []>} : vector<8x8xf32>, vector<8x512xf32>, vector<8x512xf32> -> vector<8x512xf32>
    %72 = arith.addf %67, %71 : vector<8x512xf32>
    %c3_38 = arith.constant 3 : index
    %c0_39 = arith.constant 0 : index
    %c0_40 = arith.constant 0 : index
    %73 = vector.load %arg3[%c3_38, %c0_39, %c0_40] : memref<9x8x8xf32, #tpu.memory_space<vmem>>, vector<1x8x8xf32>
    %74 = vector.shape_cast %73 : vector<1x8x8xf32> to vector<8x8xf32>
    %c96_41 = arith.constant 96 : index
    %c0_42 = arith.constant 0 : index
    %75 = vector.load %arg12[%c96_41, %c0_42] : memref<288x512xf32, #tpu.memory_space<vmem>>, vector<8x512xf32>
    %cst_43 = arith.constant dense<0.000000e+00> : vector<8x512xf32>
    %76 = tpu.matmul %74, %75, %cst_43 {dimension_numbers = #tpu.dot_dimension_numbers<[1], [0], [0], [1], [0, 0, 1, 1], [], []>} : vector<8x8xf32>, vector<8x512xf32>, vector<8x512xf32> -> vector<8x512xf32>
    %77 = arith.addf %72, %76 : vector<8x512xf32>
    %c4 = arith.constant 4 : index
    %c0_44 = arith.constant 0 : index
    %c0_45 = arith.constant 0 : index
    %78 = vector.load %arg3[%c4, %c0_44, %c0_45] : memref<9x8x8xf32, #tpu.memory_space<vmem>>, vector<1x8x8xf32>
    %79 = vector.shape_cast %78 : vector<1x8x8xf32> to vector<8x8xf32>
    %c128_46 = arith.constant 128 : index
    %c0_47 = arith.constant 0 : index
    %80 = vector.load %arg12[%c128_46, %c0_47] : memref<288x512xf32, #tpu.memory_space<vmem>>, vector<8x512xf32>
    %cst_48 = arith.constant dense<0.000000e+00> : vector<8x512xf32>
    %81 = tpu.matmul %79, %80, %cst_48 {dimension_numbers = #tpu.dot_dimension_numbers<[1], [0], [0], [1], [0, 0, 1, 1], [], []>} : vector<8x8xf32>, vector<8x512xf32>, vector<8x512xf32> -> vector<8x512xf32>
    %82 = arith.addf %77, %81 : vector<8x512xf32>
    %c5_49 = arith.constant 5 : index
    %c0_50 = arith.constant 0 : index
    %c0_51 = arith.constant 0 : index
    %83 = vector.load %arg3[%c5_49, %c0_50, %c0_51] : memref<9x8x8xf32, #tpu.memory_space<vmem>>, vector<1x8x8xf32>
    %84 = vector.shape_cast %83 : vector<1x8x8xf32> to vector<8x8xf32>
    %c160_52 = arith.constant 160 : index
    %c0_53 = arith.constant 0 : index
    %85 = vector.load %arg12[%c160_52, %c0_53] : memref<288x512xf32, #tpu.memory_space<vmem>>, vector<8x512xf32>
    %cst_54 = arith.constant dense<0.000000e+00> : vector<8x512xf32>
    %86 = tpu.matmul %84, %85, %cst_54 {dimension_numbers = #tpu.dot_dimension_numbers<[1], [0], [0], [1], [0, 0, 1, 1], [], []>} : vector<8x8xf32>, vector<8x512xf32>, vector<8x512xf32> -> vector<8x512xf32>
    %87 = arith.addf %82, %86 : vector<8x512xf32>
    %c6_55 = arith.constant 6 : index
    %c0_56 = arith.constant 0 : index
    %c0_57 = arith.constant 0 : index
    %88 = vector.load %arg3[%c6_55, %c0_56, %c0_57] : memref<9x8x8xf32, #tpu.memory_space<vmem>>, vector<1x8x8xf32>
    %89 = vector.shape_cast %88 : vector<1x8x8xf32> to vector<8x8xf32>
    %c192_58 = arith.constant 192 : index
    %c0_59 = arith.constant 0 : index
    %90 = vector.load %arg12[%c192_58, %c0_59] : memref<288x512xf32, #tpu.memory_space<vmem>>, vector<8x512xf32>
    %cst_60 = arith.constant dense<0.000000e+00> : vector<8x512xf32>
    %91 = tpu.matmul %89, %90, %cst_60 {dimension_numbers = #tpu.dot_dimension_numbers<[1], [0], [0], [1], [0, 0, 1, 1], [], []>} : vector<8x8xf32>, vector<8x512xf32>, vector<8x512xf32> -> vector<8x512xf32>
    %92 = arith.addf %87, %91 : vector<8x512xf32>
    %c7_61 = arith.constant 7 : index
    %c0_62 = arith.constant 0 : index
    %c0_63 = arith.constant 0 : index
    %93 = vector.load %arg3[%c7_61, %c0_62, %c0_63] : memref<9x8x8xf32, #tpu.memory_space<vmem>>, vector<1x8x8xf32>
    %94 = vector.shape_cast %93 : vector<1x8x8xf32> to vector<8x8xf32>
    %c224_64 = arith.constant 224 : index
    %c0_65 = arith.constant 0 : index
    %95 = vector.load %arg12[%c224_64, %c0_65] : memref<288x512xf32, #tpu.memory_space<vmem>>, vector<8x512xf32>
    %cst_66 = arith.constant dense<0.000000e+00> : vector<8x512xf32>
    %96 = tpu.matmul %94, %95, %cst_66 {dimension_numbers = #tpu.dot_dimension_numbers<[1], [0], [0], [1], [0, 0, 1, 1], [], []>} : vector<8x8xf32>, vector<8x512xf32>, vector<8x512xf32> -> vector<8x512xf32>
    %97 = arith.addf %92, %96 : vector<8x512xf32>
    %c8_67 = arith.constant 8 : index
    %c0_68 = arith.constant 0 : index
    %c0_69 = arith.constant 0 : index
    %98 = vector.load %arg3[%c8_67, %c0_68, %c0_69] : memref<9x8x8xf32, #tpu.memory_space<vmem>>, vector<1x8x8xf32>
    %99 = vector.shape_cast %98 : vector<1x8x8xf32> to vector<8x8xf32>
    %c256_70 = arith.constant 256 : index
    %c0_71 = arith.constant 0 : index
    %100 = vector.load %arg12[%c256_70, %c0_71] : memref<288x512xf32, #tpu.memory_space<vmem>>, vector<8x512xf32>
    %cst_72 = arith.constant dense<0.000000e+00> : vector<8x512xf32>
    %101 = tpu.matmul %99, %100, %cst_72 {dimension_numbers = #tpu.dot_dimension_numbers<[1], [0], [0], [1], [0, 0, 1, 1], [], []>} : vector<8x8xf32>, vector<8x512xf32>, vector<8x512xf32> -> vector<8x512xf32>
    %102 = arith.addf %97, %101 : vector<8x512xf32>
    %c0_73 = arith.constant 0 : index
    %c0_74 = arith.constant 0 : index
    %103 = vector.load %arg4[%c0_73, %c0_74] : memref<8x1xf32, #tpu.memory_space<vmem>>, vector<8x1xf32>
    %104 = vector.broadcast %103 : vector<8x1xf32> to vector<8x512xf32>
    %105 = arith.addf %102, %104 : vector<8x512xf32>
    %cst_75 = arith.constant 0.000000e+00 : f32
    %106 = vector.broadcast %cst_75 : f32 to vector<8x512xf32>
    %107 = arith.maximumf %105, %106 : vector<8x512xf32>
    %c136 = arith.constant 136 : index
    %c0_76 = arith.constant 0 : index
    %108 = vector.load %arg12[%c136, %c0_76] : memref<288x512xf32, #tpu.memory_space<vmem>>, vector<8x512xf32>
    tpu.vector_store %arg12[%c136, %c0_76], %107 {strides = array<i32>} : memref<288x512xf32, #tpu.memory_space<vmem>>, vector<8x512xf32>,
    %109 = vector.extract_strided_slice %107 {offsets = [0, 495], sizes = [8, 17], strides = [1, 1]} : vector<8x512xf32> to vector<8x17xf32>
    %110 = vector.extract_strided_slice %107 {offsets = [0, 0], sizes = [8, 495], strides = [1, 1]} : vector<8x512xf32> to vector<8x495xf32>
    %111 = tpu.concatenate %109, %110 in 1 : vector<8x17xf32>, vector<8x495xf32> -> vector<8x512xf32>
    %112 = vector.broadcast %2 : vector<1x512xf32> to vector<8x512xf32>
    %113 = arith.mulf %111, %112 : vector<8x512xf32>
    %c8_77 = arith.constant 8 : index
    %c0_78 = arith.constant 0 : index
    %114 = vector.load %arg12[%c8_77, %c0_78] : memref<288x512xf32, #tpu.memory_space<vmem>>, vector<8x512xf32>
    tpu.vector_store %arg12[%c8_77, %c0_78], %113 {strides = array<i32>} : memref<288x512xf32, #tpu.memory_space<vmem>>, vector<8x512xf32>,
    %115 = vector.extract_strided_slice %107 {offsets = [0, 496], sizes = [8, 16], strides = [1, 1]} : vector<8x512xf32> to vector<8x16xf32>
    %116 = vector.extract_strided_slice %107 {offsets = [0, 0], sizes = [8, 496], strides = [1, 1]} : vector<8x512xf32> to vector<8x496xf32>
    %117 = tpu.concatenate %115, %116 in 1 : vector<8x16xf32>, vector<8x496xf32> -> vector<8x512xf32>
    %118 = vector.broadcast %3 : vector<1x512xf32> to vector<8x512xf32>
    %119 = arith.mulf %117, %118 : vector<8x512xf32>
    %c40 = arith.constant 40 : index
    %c0_79 = arith.constant 0 : index
    %120 = vector.load %arg12[%c40, %c0_79] : memref<288x512xf32, #tpu.memory_space<vmem>>, vector<8x512xf32>
    tpu.vector_store %arg12[%c40, %c0_79], %119 {strides = array<i32>} : memref<288x512xf32, #tpu.memory_space<vmem>>, vector<8x512xf32>,
    %121 = vector.extract_strided_slice %107 {offsets = [0, 497], sizes = [8, 15], strides = [1, 1]} : vector<8x512xf32> to vector<8x15xf32>
    %122 = vector.extract_strided_slice %107 {offsets = [0, 0], sizes = [8, 497], strides = [1, 1]} : vector<8x512xf32> to vector<8x497xf32>
    %123 = tpu.concatenate %121, %122 in 1 : vector<8x15xf32>, vector<8x497xf32> -> vector<8x512xf32>
    %124 = vector.broadcast %4 : vector<1x512xf32> to vector<8x512xf32>
    %125 = arith.mulf %123, %124 : vector<8x512xf32>
    %c72 = arith.constant 72 : index
    %c0_80 = arith.constant 0 : index
    %126 = vector.load %arg12[%c72, %c0_80] : memref<288x512xf32, #tpu.memory_space<vmem>>, vector<8x512xf32>
    tpu.vector_store %arg12[%c72, %c0_80], %125 {strides = array<i32>} : memref<288x512xf32, #tpu.memory_space<vmem>>, vector<8x512xf32>,
    %127 = vector.extract_strided_slice %107 {offsets = [0, 511], sizes = [8, 1], strides = [1, 1]} : vector<8x512xf32> to vector<8x1xf32>
    %128 = vector.extract_strided_slice %107 {offsets = [0, 0], sizes = [8, 511], strides = [1, 1]} : vector<8x512xf32> to vector<8x511xf32>
    %129 = tpu.concatenate %127, %128 in 1 : vector<8x1xf32>, vector<8x511xf32> -> vector<8x512xf32>
    %130 = vector.broadcast %5 : vector<1x512xf32> to vector<8x512xf32>
    %131 = arith.mulf %129, %130 : vector<8x512xf32>
    %c104 = arith.constant 104 : index
    %c0_81 = arith.constant 0 : index
    %132 = vector.load %arg12[%c104, %c0_81] : memref<288x512xf32, #tpu.memory_space<vmem>>, vector<8x512xf32>
    tpu.vector_store %arg12[%c104, %c0_81], %131 {strides = array<i32>} : memref<288x512xf32, #tpu.memory_space<vmem>>, vector<8x512xf32>,
    %133 = vector.extract_strided_slice %107 {offsets = [0, 1], sizes = [8, 511], strides = [1, 1]} : vector<8x512xf32> to vector<8x511xf32>
    %134 = vector.extract_strided_slice %107 {offsets = [0, 0], sizes = [8, 1], strides = [1, 1]} : vector<8x512xf32> to vector<8x1xf32>
    %135 = tpu.concatenate %133, %134 in 1 : vector<8x511xf32>, vector<8x1xf32> -> vector<8x512xf32>
    %136 = vector.broadcast %6 : vector<1x512xf32> to vector<8x512xf32>
    %137 = arith.mulf %135, %136 : vector<8x512xf32>
    %c168 = arith.constant 168 : index
    %c0_82 = arith.constant 0 : index
    %138 = vector.load %arg12[%c168, %c0_82] : memref<288x512xf32, #tpu.memory_space<vmem>>, vector<8x512xf32>
    tpu.vector_store %arg12[%c168, %c0_82], %137 {strides = array<i32>} : memref<288x512xf32, #tpu.memory_space<vmem>>, vector<8x512xf32>,
    %139 = vector.extract_strided_slice %107 {offsets = [0, 15], sizes = [8, 497], strides = [1, 1]} : vector<8x512xf32> to vector<8x497xf32>
    %140 = vector.extract_strided_slice %107 {offsets = [0, 0], sizes = [8, 15], strides = [1, 1]} : vector<8x512xf32> to vector<8x15xf32>
    %141 = tpu.concatenate %139, %140 in 1 : vector<8x497xf32>, vector<8x15xf32> -> vector<8x512xf32>
    %142 = vector.broadcast %7 : vector<1x512xf32> to vector<8x512xf32>
    %143 = arith.mulf %141, %142 : vector<8x512xf32>
    %c200 = arith.constant 200 : index
    %c0_83 = arith.constant 0 : index
    %144 = vector.load %arg12[%c200, %c0_83] : memref<288x512xf32, #tpu.memory_space<vmem>>, vector<8x512xf32>
    tpu.vector_store %arg12[%c200, %c0_83], %143 {strides = array<i32>} : memref<288x512xf32, #tpu.memory_space<vmem>>, vector<8x512xf32>,
    %145 = vector.extract_strided_slice %107 {offsets = [0, 16], sizes = [8, 496], strides = [1, 1]} : vector<8x512xf32> to vector<8x496xf32>
    %146 = vector.extract_strided_slice %107 {offsets = [0, 0], sizes = [8, 16], strides = [1, 1]} : vector<8x512xf32> to vector<8x16xf32>
    %147 = tpu.concatenate %145, %146 in 1 : vector<8x496xf32>, vector<8x16xf32> -> vector<8x512xf32>
    %148 = vector.broadcast %8 : vector<1x512xf32> to vector<8x512xf32>
    %149 = arith.mulf %147, %148 : vector<8x512xf32>
    %c232 = arith.constant 232 : index
    %c0_84 = arith.constant 0 : index
    %150 = vector.load %arg12[%c232, %c0_84] : memref<288x512xf32, #tpu.memory_space<vmem>>, vector<8x512xf32>
    tpu.vector_store %arg12[%c232, %c0_84], %149 {strides = array<i32>} : memref<288x512xf32, #tpu.memory_space<vmem>>, vector<8x512xf32>,
    %151 = vector.extract_strided_slice %107 {offsets = [0, 17], sizes = [8, 495], strides = [1, 1]} : vector<8x512xf32> to vector<8x495xf32>
    %152 = vector.extract_strided_slice %107 {offsets = [0, 0], sizes = [8, 17], strides = [1, 1]} : vector<8x512xf32> to vector<8x17xf32>
    %153 = tpu.concatenate %151, %152 in 1 : vector<8x495xf32>, vector<8x17xf32> -> vector<8x512xf32>
    %154 = vector.broadcast %9 : vector<1x512xf32> to vector<8x512xf32>
    %155 = arith.mulf %153, %154 : vector<8x512xf32>
    %c264 = arith.constant 264 : index
    %c0_85 = arith.constant 0 : index
    %156 = vector.load %arg12[%c264, %c0_85] : memref<288x512xf32, #tpu.memory_space<vmem>>, vector<8x512xf32>
    tpu.vector_store %arg12[%c264, %c0_85], %155 {strides = array<i32>} : memref<288x512xf32, #tpu.memory_space<vmem>>, vector<8x512xf32>,
    %c0_86 = arith.constant 0 : index
    %c0_87 = arith.constant 0 : index
    %c0_88 = arith.constant 0 : index
    %157 = vector.load %arg5[%c0_86, %c0_87, %c0_88] : memref<9x8x16xf32, #tpu.memory_space<vmem>>, vector<1x8x16xf32>
    %158 = vector.shape_cast %157 : vector<1x8x16xf32> to vector<8x16xf32>
    %c0_89 = arith.constant 0 : index
    %c0_90 = arith.constant 0 : index
    %159 = vector.load %arg12[%c0_89, %c0_90] : memref<288x512xf32, #tpu.memory_space<vmem>>, vector<16x512xf32>
    %cst_91 = arith.constant dense<0.000000e+00> : vector<8x512xf32>
    %160 = tpu.matmul %158, %159, %cst_91 {dimension_numbers = #tpu.dot_dimension_numbers<[1], [0], [0], [1], [0, 0, 1, 1], [], []>} : vector<8x16xf32>, vector<16x512xf32>, vector<8x512xf32> -> vector<8x512xf32>
    %c1_92 = arith.constant 1 : index
    %c0_93 = arith.constant 0 : index
    %c0_94 = arith.constant 0 : index
    %161 = vector.load %arg5[%c1_92, %c0_93, %c0_94] : memref<9x8x16xf32, #tpu.memory_space<vmem>>, vector<1x8x16xf32>
    %162 = vector.shape_cast %161 : vector<1x8x16xf32> to vector<8x16xf32>
    %c32_95 = arith.constant 32 : index
    %c0_96 = arith.constant 0 : index
    %163 = vector.load %arg12[%c32_95, %c0_96] : memref<288x512xf32, #tpu.memory_space<vmem>>, vector<16x512xf32>
    %cst_97 = arith.constant dense<0.000000e+00> : vector<8x512xf32>
    %164 = tpu.matmul %162, %163, %cst_97 {dimension_numbers = #tpu.dot_dimension_numbers<[1], [0], [0], [1], [0, 0, 1, 1], [], []>} : vector<8x16xf32>, vector<16x512xf32>, vector<8x512xf32> -> vector<8x512xf32>
    %165 = arith.addf %160, %164 : vector<8x512xf32>
    %c2_98 = arith.constant 2 : index
    %c0_99 = arith.constant 0 : index
    %c0_100 = arith.constant 0 : index
    %166 = vector.load %arg5[%c2_98, %c0_99, %c0_100] : memref<9x8x16xf32, #tpu.memory_space<vmem>>, vector<1x8x16xf32>
    %167 = vector.shape_cast %166 : vector<1x8x16xf32> to vector<8x16xf32>
    %c64_101 = arith.constant 64 : index
    %c0_102 = arith.constant 0 : index
    %168 = vector.load %arg12[%c64_101, %c0_102] : memref<288x512xf32, #tpu.memory_space<vmem>>, vector<16x512xf32>
    %cst_103 = arith.constant dense<0.000000e+00> : vector<8x512xf32>
    %169 = tpu.matmul %167, %168, %cst_103 {dimension_numbers = #tpu.dot_dimension_numbers<[1], [0], [0], [1], [0, 0, 1, 1], [], []>} : vector<8x16xf32>, vector<16x512xf32>, vector<8x512xf32> -> vector<8x512xf32>
    %170 = arith.addf %165, %169 : vector<8x512xf32>
    %c3_104 = arith.constant 3 : index
    %c0_105 = arith.constant 0 : index
    %c0_106 = arith.constant 0 : index
    %171 = vector.load %arg5[%c3_104, %c0_105, %c0_106] : memref<9x8x16xf32, #tpu.memory_space<vmem>>, vector<1x8x16xf32>
    %172 = vector.shape_cast %171 : vector<1x8x16xf32> to vector<8x16xf32>
    %c96_107 = arith.constant 96 : index
    %c0_108 = arith.constant 0 : index
    %173 = vector.load %arg12[%c96_107, %c0_108] : memref<288x512xf32, #tpu.memory_space<vmem>>, vector<16x512xf32>
    %cst_109 = arith.constant dense<0.000000e+00> : vector<8x512xf32>
    %174 = tpu.matmul %172, %173, %cst_109 {dimension_numbers = #tpu.dot_dimension_numbers<[1], [0], [0], [1], [0, 0, 1, 1], [], []>} : vector<8x16xf32>, vector<16x512xf32>, vector<8x512xf32> -> vector<8x512xf32>
    %175 = arith.addf %170, %174 : vector<8x512xf32>
    %c4_110 = arith.constant 4 : index
    %c0_111 = arith.constant 0 : index
    %c0_112 = arith.constant 0 : index
    %176 = vector.load %arg5[%c4_110, %c0_111, %c0_112] : memref<9x8x16xf32, #tpu.memory_space<vmem>>, vector<1x8x16xf32>
    %177 = vector.shape_cast %176 : vector<1x8x16xf32> to vector<8x16xf32>
    %c128_113 = arith.constant 128 : index
    %c0_114 = arith.constant 0 : index
    %178 = vector.load %arg12[%c128_113, %c0_114] : memref<288x512xf32, #tpu.memory_space<vmem>>, vector<16x512xf32>
    %cst_115 = arith.constant dense<0.000000e+00> : vector<8x512xf32>
    %179 = tpu.matmul %177, %178, %cst_115 {dimension_numbers = #tpu.dot_dimension_numbers<[1], [0], [0], [1], [0, 0, 1, 1], [], []>} : vector<8x16xf32>, vector<16x512xf32>, vector<8x512xf32> -> vector<8x512xf32>
    %180 = arith.addf %175, %179 : vector<8x512xf32>
    %c5_116 = arith.constant 5 : index
    %c0_117 = arith.constant 0 : index
    %c0_118 = arith.constant 0 : index
    %181 = vector.load %arg5[%c5_116, %c0_117, %c0_118] : memref<9x8x16xf32, #tpu.memory_space<vmem>>, vector<1x8x16xf32>
    %182 = vector.shape_cast %181 : vector<1x8x16xf32> to vector<8x16xf32>
    %c160_119 = arith.constant 160 : index
    %c0_120 = arith.constant 0 : index
    %183 = vector.load %arg12[%c160_119, %c0_120] : memref<288x512xf32, #tpu.memory_space<vmem>>, vector<16x512xf32>
    %cst_121 = arith.constant dense<0.000000e+00> : vector<8x512xf32>
    %184 = tpu.matmul %182, %183, %cst_121 {dimension_numbers = #tpu.dot_dimension_numbers<[1], [0], [0], [1], [0, 0, 1, 1], [], []>} : vector<8x16xf32>, vector<16x512xf32>, vector<8x512xf32> -> vector<8x512xf32>
    %185 = arith.addf %180, %184 : vector<8x512xf32>
    %c6_122 = arith.constant 6 : index
    %c0_123 = arith.constant 0 : index
    %c0_124 = arith.constant 0 : index
    %186 = vector.load %arg5[%c6_122, %c0_123, %c0_124] : memref<9x8x16xf32, #tpu.memory_space<vmem>>, vector<1x8x16xf32>
    %187 = vector.shape_cast %186 : vector<1x8x16xf32> to vector<8x16xf32>
    %c192_125 = arith.constant 192 : index
    %c0_126 = arith.constant 0 : index
    %188 = vector.load %arg12[%c192_125, %c0_126] : memref<288x512xf32, #tpu.memory_space<vmem>>, vector<16x512xf32>
    %cst_127 = arith.constant dense<0.000000e+00> : vector<8x512xf32>
    %189 = tpu.matmul %187, %188, %cst_127 {dimension_numbers = #tpu.dot_dimension_numbers<[1], [0], [0], [1], [0, 0, 1, 1], [], []>} : vector<8x16xf32>, vector<16x512xf32>, vector<8x512xf32> -> vector<8x512xf32>
    %190 = arith.addf %185, %189 : vector<8x512xf32>
    %c7_128 = arith.constant 7 : index
    %c0_129 = arith.constant 0 : index
    %c0_130 = arith.constant 0 : index
    %191 = vector.load %arg5[%c7_128, %c0_129, %c0_130] : memref<9x8x16xf32, #tpu.memory_space<vmem>>, vector<1x8x16xf32>
    %192 = vector.shape_cast %191 : vector<1x8x16xf32> to vector<8x16xf32>
    %c224_131 = arith.constant 224 : index
    %c0_132 = arith.constant 0 : index
    %193 = vector.load %arg12[%c224_131, %c0_132] : memref<288x512xf32, #tpu.memory_space<vmem>>, vector<16x512xf32>
    %cst_133 = arith.constant dense<0.000000e+00> : vector<8x512xf32>
    %194 = tpu.matmul %192, %193, %cst_133 {dimension_numbers = #tpu.dot_dimension_numbers<[1], [0], [0], [1], [0, 0, 1, 1], [], []>} : vector<8x16xf32>, vector<16x512xf32>, vector<8x512xf32> -> vector<8x512xf32>
    %195 = arith.addf %190, %194 : vector<8x512xf32>
    %c8_134 = arith.constant 8 : index
    %c0_135 = arith.constant 0 : index
    %c0_136 = arith.constant 0 : index
    %196 = vector.load %arg5[%c8_134, %c0_135, %c0_136] : memref<9x8x16xf32, #tpu.memory_space<vmem>>, vector<1x8x16xf32>
    %197 = vector.shape_cast %196 : vector<1x8x16xf32> to vector<8x16xf32>
    %c256_137 = arith.constant 256 : index
    %c0_138 = arith.constant 0 : index
    %198 = vector.load %arg12[%c256_137, %c0_138] : memref<288x512xf32, #tpu.memory_space<vmem>>, vector<16x512xf32>
    %cst_139 = arith.constant dense<0.000000e+00> : vector<8x512xf32>
    %199 = tpu.matmul %197, %198, %cst_139 {dimension_numbers = #tpu.dot_dimension_numbers<[1], [0], [0], [1], [0, 0, 1, 1], [], []>} : vector<8x16xf32>, vector<16x512xf32>, vector<8x512xf32> -> vector<8x512xf32>
    %200 = arith.addf %195, %199 : vector<8x512xf32>
    %c0_140 = arith.constant 0 : index
    %c0_141 = arith.constant 0 : index
    %201 = vector.load %arg6[%c0_140, %c0_141] : memref<8x1xf32, #tpu.memory_space<vmem>>, vector<8x1xf32>
    %202 = vector.broadcast %201 : vector<8x1xf32> to vector<8x512xf32>
    %203 = arith.addf %200, %202 : vector<8x512xf32>
    %cst_142 = arith.constant 0.000000e+00 : f32
    %204 = vector.broadcast %cst_142 : f32 to vector<8x512xf32>
    %205 = arith.maximumf %203, %204 : vector<8x512xf32>
    %c144 = arith.constant 144 : index
    %c0_143 = arith.constant 0 : index
    %206 = vector.load %arg12[%c144, %c0_143] : memref<288x512xf32, #tpu.memory_space<vmem>>, vector<8x512xf32>
    tpu.vector_store %arg12[%c144, %c0_143], %205 {strides = array<i32>} : memref<288x512xf32, #tpu.memory_space<vmem>>, vector<8x512xf32>,
    %207 = vector.extract_strided_slice %205 {offsets = [0, 495], sizes = [8, 17], strides = [1, 1]} : vector<8x512xf32> to vector<8x17xf32>
    %208 = vector.extract_strided_slice %205 {offsets = [0, 0], sizes = [8, 495], strides = [1, 1]} : vector<8x512xf32> to vector<8x495xf32>
    %209 = tpu.concatenate %207, %208 in 1 : vector<8x17xf32>, vector<8x495xf32> -> vector<8x512xf32>
    %210 = vector.broadcast %2 : vector<1x512xf32> to vector<8x512xf32>
    %211 = arith.mulf %209, %210 : vector<8x512xf32>
    %c16 = arith.constant 16 : index
    %c0_144 = arith.constant 0 : index
    %212 = vector.load %arg12[%c16, %c0_144] : memref<288x512xf32, #tpu.memory_space<vmem>>, vector<8x512xf32>
    tpu.vector_store %arg12[%c16, %c0_144], %211 {strides = array<i32>} : memref<288x512xf32, #tpu.memory_space<vmem>>, vector<8x512xf32>,
    %213 = vector.extract_strided_slice %205 {offsets = [0, 496], sizes = [8, 16], strides = [1, 1]} : vector<8x512xf32> to vector<8x16xf32>
    %214 = vector.extract_strided_slice %205 {offsets = [0, 0], sizes = [8, 496], strides = [1, 1]} : vector<8x512xf32> to vector<8x496xf32>
    %215 = tpu.concatenate %213, %214 in 1 : vector<8x16xf32>, vector<8x496xf32> -> vector<8x512xf32>
    %216 = vector.broadcast %3 : vector<1x512xf32> to vector<8x512xf32>
    %217 = arith.mulf %215, %216 : vector<8x512xf32>
    %c48 = arith.constant 48 : index
    %c0_145 = arith.constant 0 : index
    %218 = vector.load %arg12[%c48, %c0_145] : memref<288x512xf32, #tpu.memory_space<vmem>>, vector<8x512xf32>
    tpu.vector_store %arg12[%c48, %c0_145], %217 {strides = array<i32>} : memref<288x512xf32, #tpu.memory_space<vmem>>, vector<8x512xf32>,
    %219 = vector.extract_strided_slice %205 {offsets = [0, 497], sizes = [8, 15], strides = [1, 1]} : vector<8x512xf32> to vector<8x15xf32>
    %220 = vector.extract_strided_slice %205 {offsets = [0, 0], sizes = [8, 497], strides = [1, 1]} : vector<8x512xf32> to vector<8x497xf32>
    %221 = tpu.concatenate %219, %220 in 1 : vector<8x15xf32>, vector<8x497xf32> -> vector<8x512xf32>
    %222 = vector.broadcast %4 : vector<1x512xf32> to vector<8x512xf32>
    %223 = arith.mulf %221, %222 : vector<8x512xf32>
    %c80 = arith.constant 80 : index
    %c0_146 = arith.constant 0 : index
    %224 = vector.load %arg12[%c80, %c0_146] : memref<288x512xf32, #tpu.memory_space<vmem>>, vector<8x512xf32>
    tpu.vector_store %arg12[%c80, %c0_146], %223 {strides = array<i32>} : memref<288x512xf32, #tpu.memory_space<vmem>>, vector<8x512xf32>,
    %225 = vector.extract_strided_slice %205 {offsets = [0, 511], sizes = [8, 1], strides = [1, 1]} : vector<8x512xf32> to vector<8x1xf32>
    %226 = vector.extract_strided_slice %205 {offsets = [0, 0], sizes = [8, 511], strides = [1, 1]} : vector<8x512xf32> to vector<8x511xf32>
    %227 = tpu.concatenate %225, %226 in 1 : vector<8x1xf32>, vector<8x511xf32> -> vector<8x512xf32>
    %228 = vector.broadcast %5 : vector<1x512xf32> to vector<8x512xf32>
    %229 = arith.mulf %227, %228 : vector<8x512xf32>
    %c112 = arith.constant 112 : index
    %c0_147 = arith.constant 0 : index
    %230 = vector.load %arg12[%c112, %c0_147] : memref<288x512xf32, #tpu.memory_space<vmem>>, vector<8x512xf32>
    tpu.vector_store %arg12[%c112, %c0_147], %229 {strides = array<i32>} : memref<288x512xf32, #tpu.memory_space<vmem>>, vector<8x512xf32>,
    %231 = vector.extract_strided_slice %205 {offsets = [0, 1], sizes = [8, 511], strides = [1, 1]} : vector<8x512xf32> to vector<8x511xf32>
    %232 = vector.extract_strided_slice %205 {offsets = [0, 0], sizes = [8, 1], strides = [1, 1]} : vector<8x512xf32> to vector<8x1xf32>
    %233 = tpu.concatenate %231, %232 in 1 : vector<8x511xf32>, vector<8x1xf32> -> vector<8x512xf32>
    %234 = vector.broadcast %6 : vector<1x512xf32> to vector<8x512xf32>
    %235 = arith.mulf %233, %234 : vector<8x512xf32>
    %c176 = arith.constant 176 : index
    %c0_148 = arith.constant 0 : index
    %236 = vector.load %arg12[%c176, %c0_148] : memref<288x512xf32, #tpu.memory_space<vmem>>, vector<8x512xf32>
    tpu.vector_store %arg12[%c176, %c0_148], %235 {strides = array<i32>} : memref<288x512xf32, #tpu.memory_space<vmem>>, vector<8x512xf32>,
    %237 = vector.extract_strided_slice %205 {offsets = [0, 15], sizes = [8, 497], strides = [1, 1]} : vector<8x512xf32> to vector<8x497xf32>
    %238 = vector.extract_strided_slice %205 {offsets = [0, 0], sizes = [8, 15], strides = [1, 1]} : vector<8x512xf32> to vector<8x15xf32>
    %239 = tpu.concatenate %237, %238 in 1 : vector<8x497xf32>, vector<8x15xf32> -> vector<8x512xf32>
    %240 = vector.broadcast %7 : vector<1x512xf32> to vector<8x512xf32>
    %241 = arith.mulf %239, %240 : vector<8x512xf32>
    %c208 = arith.constant 208 : index
    %c0_149 = arith.constant 0 : index
    %242 = vector.load %arg12[%c208, %c0_149] : memref<288x512xf32, #tpu.memory_space<vmem>>, vector<8x512xf32>
    tpu.vector_store %arg12[%c208, %c0_149], %241 {strides = array<i32>} : memref<288x512xf32, #tpu.memory_space<vmem>>, vector<8x512xf32>,
    %243 = vector.extract_strided_slice %205 {offsets = [0, 16], sizes = [8, 496], strides = [1, 1]} : vector<8x512xf32> to vector<8x496xf32>
    %244 = vector.extract_strided_slice %205 {offsets = [0, 0], sizes = [8, 16], strides = [1, 1]} : vector<8x512xf32> to vector<8x16xf32>
    %245 = tpu.concatenate %243, %244 in 1 : vector<8x496xf32>, vector<8x16xf32> -> vector<8x512xf32>
    %246 = vector.broadcast %8 : vector<1x512xf32> to vector<8x512xf32>
    %247 = arith.mulf %245, %246 : vector<8x512xf32>
    %c240 = arith.constant 240 : index
    %c0_150 = arith.constant 0 : index
    %248 = vector.load %arg12[%c240, %c0_150] : memref<288x512xf32, #tpu.memory_space<vmem>>, vector<8x512xf32>
    tpu.vector_store %arg12[%c240, %c0_150], %247 {strides = array<i32>} : memref<288x512xf32, #tpu.memory_space<vmem>>, vector<8x512xf32>,
    %249 = vector.extract_strided_slice %205 {offsets = [0, 17], sizes = [8, 495], strides = [1, 1]} : vector<8x512xf32> to vector<8x495xf32>
    %250 = vector.extract_strided_slice %205 {offsets = [0, 0], sizes = [8, 17], strides = [1, 1]} : vector<8x512xf32> to vector<8x17xf32>
    %251 = tpu.concatenate %249, %250 in 1 : vector<8x495xf32>, vector<8x17xf32> -> vector<8x512xf32>
    %252 = vector.broadcast %9 : vector<1x512xf32> to vector<8x512xf32>
    %253 = arith.mulf %251, %252 : vector<8x512xf32>
    %c272 = arith.constant 272 : index
    %c0_151 = arith.constant 0 : index
    %254 = vector.load %arg12[%c272, %c0_151] : memref<288x512xf32, #tpu.memory_space<vmem>>, vector<8x512xf32>
    tpu.vector_store %arg12[%c272, %c0_151], %253 {strides = array<i32>} : memref<288x512xf32, #tpu.memory_space<vmem>>, vector<8x512xf32>,
    %c0_152 = arith.constant 0 : index
    %c0_153 = arith.constant 0 : index
    %c0_154 = arith.constant 0 : index
    %255 = vector.load %arg7[%c0_152, %c0_153, %c0_154] : memref<9x8x24xf32, #tpu.memory_space<vmem>>, vector<1x8x24xf32>
    %256 = vector.shape_cast %255 : vector<1x8x24xf32> to vector<8x24xf32>
    %c0_155 = arith.constant 0 : index
    %c0_156 = arith.constant 0 : index
    %257 = vector.load %arg12[%c0_155, %c0_156] : memref<288x512xf32, #tpu.memory_space<vmem>>, vector<24x512xf32>
    %cst_157 = arith.constant dense<0.000000e+00> : vector<8x512xf32>
    %258 = tpu.matmul %256, %257, %cst_157 {dimension_numbers = #tpu.dot_dimension_numbers<[1], [0], [0], [1], [0, 0, 1, 1], [], []>} : vector<8x24xf32>, vector<24x512xf32>, vector<8x512xf32> -> vector<8x512xf32>
    %c1_158 = arith.constant 1 : index
    %c0_159 = arith.constant 0 : index
    %c0_160 = arith.constant 0 : index
    %259 = vector.load %arg7[%c1_158, %c0_159, %c0_160] : memref<9x8x24xf32, #tpu.memory_space<vmem>>, vector<1x8x24xf32>
    %260 = vector.shape_cast %259 : vector<1x8x24xf32> to vector<8x24xf32>
    %c32_161 = arith.constant 32 : index
    %c0_162 = arith.constant 0 : index
    %261 = vector.load %arg12[%c32_161, %c0_162] : memref<288x512xf32, #tpu.memory_space<vmem>>, vector<24x512xf32>
    %cst_163 = arith.constant dense<0.000000e+00> : vector<8x512xf32>
    %262 = tpu.matmul %260, %261, %cst_163 {dimension_numbers = #tpu.dot_dimension_numbers<[1], [0], [0], [1], [0, 0, 1, 1], [], []>} : vector<8x24xf32>, vector<24x512xf32>, vector<8x512xf32> -> vector<8x512xf32>
    %263 = arith.addf %258, %262 : vector<8x512xf32>
    %c2_164 = arith.constant 2 : index
    %c0_165 = arith.constant 0 : index
    %c0_166 = arith.constant 0 : index
    %264 = vector.load %arg7[%c2_164, %c0_165, %c0_166] : memref<9x8x24xf32, #tpu.memory_space<vmem>>, vector<1x8x24xf32>
    %265 = vector.shape_cast %264 : vector<1x8x24xf32> to vector<8x24xf32>
    %c64_167 = arith.constant 64 : index
    %c0_168 = arith.constant 0 : index
    %266 = vector.load %arg12[%c64_167, %c0_168] : memref<288x512xf32, #tpu.memory_space<vmem>>, vector<24x512xf32>
    %cst_169 = arith.constant dense<0.000000e+00> : vector<8x512xf32>
    %267 = tpu.matmul %265, %266, %cst_169 {dimension_numbers = #tpu.dot_dimension_numbers<[1], [0], [0], [1], [0, 0, 1, 1], [], []>} : vector<8x24xf32>, vector<24x512xf32>, vector<8x512xf32> -> vector<8x512xf32>
    %268 = arith.addf %263, %267 : vector<8x512xf32>
    %c3_170 = arith.constant 3 : index
    %c0_171 = arith.constant 0 : index
    %c0_172 = arith.constant 0 : index
    %269 = vector.load %arg7[%c3_170, %c0_171, %c0_172] : memref<9x8x24xf32, #tpu.memory_space<vmem>>, vector<1x8x24xf32>
    %270 = vector.shape_cast %269 : vector<1x8x24xf32> to vector<8x24xf32>
    %c96_173 = arith.constant 96 : index
    %c0_174 = arith.constant 0 : index
    %271 = vector.load %arg12[%c96_173, %c0_174] : memref<288x512xf32, #tpu.memory_space<vmem>>, vector<24x512xf32>
    %cst_175 = arith.constant dense<0.000000e+00> : vector<8x512xf32>
    %272 = tpu.matmul %270, %271, %cst_175 {dimension_numbers = #tpu.dot_dimension_numbers<[1], [0], [0], [1], [0, 0, 1, 1], [], []>} : vector<8x24xf32>, vector<24x512xf32>, vector<8x512xf32> -> vector<8x512xf32>
    %273 = arith.addf %268, %272 : vector<8x512xf32>
    %c4_176 = arith.constant 4 : index
    %c0_177 = arith.constant 0 : index
    %c0_178 = arith.constant 0 : index
    %274 = vector.load %arg7[%c4_176, %c0_177, %c0_178] : memref<9x8x24xf32, #tpu.memory_space<vmem>>, vector<1x8x24xf32>
    %275 = vector.shape_cast %274 : vector<1x8x24xf32> to vector<8x24xf32>
    %c128_179 = arith.constant 128 : index
    %c0_180 = arith.constant 0 : index
    %276 = vector.load %arg12[%c128_179, %c0_180] : memref<288x512xf32, #tpu.memory_space<vmem>>, vector<24x512xf32>
    %cst_181 = arith.constant dense<0.000000e+00> : vector<8x512xf32>
    %277 = tpu.matmul %275, %276, %cst_181 {dimension_numbers = #tpu.dot_dimension_numbers<[1], [0], [0], [1], [0, 0, 1, 1], [], []>} : vector<8x24xf32>, vector<24x512xf32>, vector<8x512xf32> -> vector<8x512xf32>
    %278 = arith.addf %273, %277 : vector<8x512xf32>
    %c5_182 = arith.constant 5 : index
    %c0_183 = arith.constant 0 : index
    %c0_184 = arith.constant 0 : index
    %279 = vector.load %arg7[%c5_182, %c0_183, %c0_184] : memref<9x8x24xf32, #tpu.memory_space<vmem>>, vector<1x8x24xf32>
    %280 = vector.shape_cast %279 : vector<1x8x24xf32> to vector<8x24xf32>
    %c160_185 = arith.constant 160 : index
    %c0_186 = arith.constant 0 : index
    %281 = vector.load %arg12[%c160_185, %c0_186] : memref<288x512xf32, #tpu.memory_space<vmem>>, vector<24x512xf32>
    %cst_187 = arith.constant dense<0.000000e+00> : vector<8x512xf32>
    %282 = tpu.matmul %280, %281, %cst_187 {dimension_numbers = #tpu.dot_dimension_numbers<[1], [0], [0], [1], [0, 0, 1, 1], [], []>} : vector<8x24xf32>, vector<24x512xf32>, vector<8x512xf32> -> vector<8x512xf32>
    %283 = arith.addf %278, %282 : vector<8x512xf32>
    %c6_188 = arith.constant 6 : index
    %c0_189 = arith.constant 0 : index
    %c0_190 = arith.constant 0 : index
    %284 = vector.load %arg7[%c6_188, %c0_189, %c0_190] : memref<9x8x24xf32, #tpu.memory_space<vmem>>, vector<1x8x24xf32>
    %285 = vector.shape_cast %284 : vector<1x8x24xf32> to vector<8x24xf32>
    %c192_191 = arith.constant 192 : index
    %c0_192 = arith.constant 0 : index
    %286 = vector.load %arg12[%c192_191, %c0_192] : memref<288x512xf32, #tpu.memory_space<vmem>>, vector<24x512xf32>
    %cst_193 = arith.constant dense<0.000000e+00> : vector<8x512xf32>
    %287 = tpu.matmul %285, %286, %cst_193 {dimension_numbers = #tpu.dot_dimension_numbers<[1], [0], [0], [1], [0, 0, 1, 1], [], []>} : vector<8x24xf32>, vector<24x512xf32>, vector<8x512xf32> -> vector<8x512xf32>
    %288 = arith.addf %283, %287 : vector<8x512xf32>
    %c7_194 = arith.constant 7 : index
    %c0_195 = arith.constant 0 : index
    %c0_196 = arith.constant 0 : index
    %289 = vector.load %arg7[%c7_194, %c0_195, %c0_196] : memref<9x8x24xf32, #tpu.memory_space<vmem>>, vector<1x8x24xf32>
    %290 = vector.shape_cast %289 : vector<1x8x24xf32> to vector<8x24xf32>
    %c224_197 = arith.constant 224 : index
    %c0_198 = arith.constant 0 : index
    %291 = vector.load %arg12[%c224_197, %c0_198] : memref<288x512xf32, #tpu.memory_space<vmem>>, vector<24x512xf32>
    %cst_199 = arith.constant dense<0.000000e+00> : vector<8x512xf32>
    %292 = tpu.matmul %290, %291, %cst_199 {dimension_numbers = #tpu.dot_dimension_numbers<[1], [0], [0], [1], [0, 0, 1, 1], [], []>} : vector<8x24xf32>, vector<24x512xf32>, vector<8x512xf32> -> vector<8x512xf32>
    %293 = arith.addf %288, %292 : vector<8x512xf32>
    %c8_200 = arith.constant 8 : index
    %c0_201 = arith.constant 0 : index
    %c0_202 = arith.constant 0 : index
    %294 = vector.load %arg7[%c8_200, %c0_201, %c0_202] : memref<9x8x24xf32, #tpu.memory_space<vmem>>, vector<1x8x24xf32>
    %295 = vector.shape_cast %294 : vector<1x8x24xf32> to vector<8x24xf32>
    %c256_203 = arith.constant 256 : index
    %c0_204 = arith.constant 0 : index
    %296 = vector.load %arg12[%c256_203, %c0_204] : memref<288x512xf32, #tpu.memory_space<vmem>>, vector<24x512xf32>
    %cst_205 = arith.constant dense<0.000000e+00> : vector<8x512xf32>
    %297 = tpu.matmul %295, %296, %cst_205 {dimension_numbers = #tpu.dot_dimension_numbers<[1], [0], [0], [1], [0, 0, 1, 1], [], []>} : vector<8x24xf32>, vector<24x512xf32>, vector<8x512xf32> -> vector<8x512xf32>
    %298 = arith.addf %293, %297 : vector<8x512xf32>
    %c0_206 = arith.constant 0 : index
    %c0_207 = arith.constant 0 : index
    %299 = vector.load %arg8[%c0_206, %c0_207] : memref<8x1xf32, #tpu.memory_space<vmem>>, vector<8x1xf32>
    %300 = vector.broadcast %299 : vector<8x1xf32> to vector<8x512xf32>
    %301 = arith.addf %298, %300 : vector<8x512xf32>
    %cst_208 = arith.constant 0.000000e+00 : f32
    %302 = vector.broadcast %cst_208 : f32 to vector<8x512xf32>
    %303 = arith.maximumf %301, %302 : vector<8x512xf32>
    %c152 = arith.constant 152 : index
    %c0_209 = arith.constant 0 : index
    %304 = vector.load %arg12[%c152, %c0_209] : memref<288x512xf32, #tpu.memory_space<vmem>>, vector<8x512xf32>
    tpu.vector_store %arg12[%c152, %c0_209], %303 {strides = array<i32>} : memref<288x512xf32, #tpu.memory_space<vmem>>, vector<8x512xf32>,
    %c128_210 = arith.constant 128 : index
    %c0_211 = arith.constant 0 : index
    %305 = vector.load %arg12[%c128_210, %c0_211] : memref<288x512xf32, #tpu.memory_space<vmem>>, vector<32x512xf32>
    %c0_212 = arith.constant 0 : index
    %c0_213 = arith.constant 0 : index
    %306 = vector.load %arg9[%c0_212, %c0_213] : memref<8x32xf32, #tpu.memory_space<vmem>>, vector<8x32xf32>
    %cst_214 = arith.constant dense<0.000000e+00> : vector<8x512xf32>
    %307 = tpu.matmul %306, %305, %cst_214 {dimension_numbers = #tpu.dot_dimension_numbers<[1], [0], [0], [1], [0, 0, 1, 1], [], []>} : vector<8x32xf32>, vector<32x512xf32>, vector<8x512xf32> -> vector<8x512xf32>
    %c0_215 = arith.constant 0 : index
    %c0_216 = arith.constant 0 : index
    %308 = vector.load %arg10[%c0_215, %c0_216] : memref<8x1xf32, #tpu.memory_space<vmem>>, vector<8x1xf32>
    %309 = vector.broadcast %308 : vector<8x1xf32> to vector<8x512xf32>
    %310 = arith.addf %307, %309 : vector<8x512xf32>
    %311 = arith.addf %310, %1 : vector<8x512xf32>
    %c0_217 = arith.constant 0 : index
    %c0_218 = arith.constant 0 : index
    %c0_219 = arith.constant 0 : index
    %312 = vector.load %arg11[%c0_217, %c0_218, %c0_219] : memref<1x8x512xf32, #tpu.memory_space<vmem>>, vector<1x8x512xf32>
    %313 = vector.shape_cast %312 : vector<1x8x512xf32> to vector<8x512xf32>
    %314 = vector.shape_cast %311 : vector<8x512xf32> to vector<1x8x512xf32>
    tpu.vector_store %arg11[%c0_217, %c0_218, %c0_219], %314 {strides = array<i32>} : memref<1x8x512xf32, #tpu.memory_space<vmem>>, vector<1x8x512xf32>,
    return
  }
  func.func @transform_0(%arg0: i32) -> (i32, i32, i32) {
    %c0_i32 = arith.constant 0 : i32
    %c0_i32_0 = arith.constant 0 : i32
    %c0_i32_1 = arith.constant 0 : i32
    return %arg0, %c0_i32, %c0_i32_0 : i32, i32, i32
  }
  func.func @transform_1(%arg0: i32) -> (i32, i32) {
    %c0_i32 = arith.constant 0 : i32
    %c0_i32_0 = arith.constant 0 : i32
    %c0_i32_1 = arith.constant 0 : i32
    return %c0_i32, %c0_i32_0 : i32, i32
  }
  func.func @transform_2(%arg0: i32) -> (i32, i32, i32) {
    %c0_i32 = arith.constant 0 : i32
    %c0_i32_0 = arith.constant 0 : i32
    %c0_i32_1 = arith.constant 0 : i32
    %c0_i32_2 = arith.constant 0 : i32
    return %c0_i32, %c0_i32_0, %c0_i32_1 : i32, i32, i32
  }
  func.func @transform_3(%arg0: i32) -> (i32, i32) {
    %c0_i32 = arith.constant 0 : i32
    %c0_i32_0 = arith.constant 0 : i32
    %c0_i32_1 = arith.constant 0 : i32
    return %c0_i32, %c0_i32_0 : i32, i32
  }
  func.func @transform_4(%arg0: i32) -> (i32, i32, i32) {
    %c0_i32 = arith.constant 0 : i32
    %c0_i32_0 = arith.constant 0 : i32
    %c0_i32_1 = arith.constant 0 : i32
    %c0_i32_2 = arith.constant 0 : i32
    return %c0_i32, %c0_i32_0, %c0_i32_1 : i32, i32, i32
  }
  func.func @transform_5(%arg0: i32) -> (i32, i32) {
    %c0_i32 = arith.constant 0 : i32
    %c0_i32_0 = arith.constant 0 : i32
    %c0_i32_1 = arith.constant 0 : i32
    return %c0_i32, %c0_i32_0 : i32, i32
  }
  func.func @transform_6(%arg0: i32) -> (i32, i32, i32) {
    %c0_i32 = arith.constant 0 : i32
    %c0_i32_0 = arith.constant 0 : i32
    %c0_i32_1 = arith.constant 0 : i32
    %c0_i32_2 = arith.constant 0 : i32
    return %c0_i32, %c0_i32_0, %c0_i32_1 : i32, i32, i32
  }
  func.func @transform_7(%arg0: i32) -> (i32, i32) {
    %c0_i32 = arith.constant 0 : i32
    %c0_i32_0 = arith.constant 0 : i32
    %c0_i32_1 = arith.constant 0 : i32
    return %c0_i32, %c0_i32_0 : i32, i32
  }
  func.func @transform_8(%arg0: i32) -> (i32, i32) {
    %c0_i32 = arith.constant 0 : i32
    %c0_i32_0 = arith.constant 0 : i32
    %c0_i32_1 = arith.constant 0 : i32
    return %c0_i32, %c0_i32_0 : i32, i32
  }
  func.func @transform_9(%arg0: i32) -> (i32, i32) {
    %c0_i32 = arith.constant 0 : i32
    %c0_i32_0 = arith.constant 0 : i32
    %c0_i32_1 = arith.constant 0 : i32
    return %c0_i32, %c0_i32_0 : i32, i32
  }
  func.func @transform_10(%arg0: i32) -> (i32, i32, i32) {
    %c0_i32 = arith.constant 0 : i32
    %c0_i32_0 = arith.constant 0 : i32
    %c0_i32_1 = arith.constant 0 : i32
    return %arg0, %c0_i32, %c0_i32_0 : i32, i32, i32
  }
}

</mosaic_0001>

<bundles_post_ra>
// kernel: forward.1
= control target key start
LH: loop header
LB: loop body
LE: loop exit
PB: predicated region body
PF: predicated region fallthrough
CT: control target
= control target key end

     0   :  { %v6859_v2 = vmov 0.0   ;;  %s5709_s17 = smov 16   ;;  %s5710_s22 = smov 17   ;;  %v5717_v5 = vmov 0   ;;  %v77_v7 = vlaneseq  ;;  %vm114_vm0 = vcmask 130048   ;;  %s6847_s0 = inlined_call_operand.vmem [shape: f32[1,8,512], index: 0, kind: input, shape index: {}]   ;;  %s6848_s3 = inlined_call_operand.vmem [shape: f32[8,1], index: 3, kind: input, shape index: {}]   ;;  %s6849_s1 = inlined_call_operand.vmem [shape: f32[9,512], index: 1, kind: input, shape index: {}]   ;;  %s6850_s2 = inlined_call_operand.vmem [shape: f32[9,8,8], index: 2, kind: input, shape index: {}]   ;;  %s6851_s5 = inlined_call_operand.vmem [shape: f32[8,1], index: 5, kind: input, shape index: {}]   ;;  %s6852_s4 = inlined_call_operand.vmem [shape: f32[9,8,16], index: 4, kind: input, shape index: {}]   ;;  %s6853_s9 = inlined_call_operand.vmem [shape: f32[8,1], index: 9, kind: input, shape index: {}]   ;;  %s6854_s7 = inlined_call_operand.vmem [shape: f32[8,1], index: 7, kind: input, shape index: {}]   ;;  %s6855_s6 = inlined_call_operand.vmem [shape: f32[9,8,24], index: 6, kind: input, shape index: {}]   ;;  %s6856_s8 = inlined_call_operand.vmem [shape: f32[8,32], index: 8, kind: input, shape index: {}]   ;;  %s6857_s10 = inlined_call_operand.vmem [shape: f32[1,8,512], index: 10, kind: output, shape index: {}]  }
   0x1   :  { %v5776_v0 = vld [vmem:[%s6847_s0 + $0x18] sm:$0xff]  ;;  %v5781_v1 = vld [vmem:[%s6847_s0 + $0x8] sm:$0xff]  ;;  %517 = vmatprep.mubr.f32.mxu0 %v6859_v2  ;;  %588 = vmatprep.mubr.f32.mxu1 %v6859_v2  ;;  %v5792_v3 = vld [vmem:[%s6847_s0 + $0x10] sm:$0xff]  ;;  %s5711_s23 = smov 15   ;;  %s5712_s24 = smov 1   ;;  %vm449_vm1 = vcmask 64512  }
   0x2   :  { %105 = vrot.lane.b32.xlu0 %v5776_v0, %s5709_s17  ;;  %110 = vrot.lane.b32.xlu1 %v5781_v1, %s5709_s17  ;;  %v5797_v4 = vld [vmem:[%s6847_s0] sm:$0xff]  ;;  %s5713_s25 = smov 127   ;;  %s5714_s26 = smov 113   ;;  %v78_v8 = vshrl.u32 %v77_v7, 7  ;;  %v5356_v30 = vld [vmem:[%s6850_s2 + $0x8] sm:$0xff]  ;;  %vm67_vm2 = vcmask 138240  }
   0x3   :  { %s5715_s27 = smov 112   ;;  %s5716_s28 = smov 111   ;;  %5702 = vset.pattern.permute.xlu0 %v5717_v5  ;;  %v1825_v6 = vld [vmem:[%s6848_s3] sm:$0xff]  ;;  %5703 = vset.pattern.permute.xlu1 %v5717_v5  ;;  %vm161_vm3 = vcmask 121856   ;;  %v5361_v7 = vld [vmem:[%s6850_s2 + $0x10] sm:$0xff]  ;;  %vm208_vm4 = vcmask 7168  }
   0x4   :  { %v5862_v9 = vsub.s32 3, %v78_v8  ;;  %v5864_v10 = vsub.s32 1, %v78_v8  ;;  %v5866_v11 = vsub.s32 0, %v78_v8  ;;  %v5868_v12 = vsub.s32 2, %v78_v8  ;;  %v438_v48 = vld [vmem:[%s6850_s2] sm:$0xff] }
   0x5   :  { %v5349_v13 = vld [vmem:[%s6849_s1 + $0x1] ss:$8 sm:$0xf]  ;;  %v39_v32 = vld [vmem:[%s6849_s1] ss:$8 sm:$0xf] }
   0x6   :  { %112 = vrot.lane.b32.xlu1 %v5792_v3, %s5709_s17  ;;  %108 = vrot.lane.b32.xlu0 %v5797_v4, %s5709_s17  ;;  %v5874_v16 = vrot.slane %v5349_v13, %v5862_v9  ;;  %v5877_v17 = vrot.slane %v5349_v13, %v5864_v10  ;;  %v5880_v18 = vrot.slane %v5349_v13, %v5866_v11  ;;  %v5350_v50 = vld [vmem:[%s6849_s1 + $0x2] ss:$8 sm:$0xf]  ;;  %vm258_vm5 = vcmask 1039360  }
   0x7   :  { %v5883_v19 = vrot.slane %v5349_v13, %v5868_v12  ;;  %v5914_v34 = vrot.slane %v39_v32, %v5862_v9  ;;  %v5917_v35 = vrot.slane %v39_v32, %v5864_v10  ;;  %v5920_v36 = vrot.slane %v39_v32, %v5868_v12  ;;  %v5351_v13 = vld [vmem:[%s6849_s1 + $0x3] ss:$8 sm:$0xf] }
   0x8   :  { %6903 = vst [vmem:[#allocation3_spill] sm:$0xff] %v5877_v17  ;;  %v5923_v37 = vrot.slane %v39_v32, %v5866_v11  ;;  %v5956_v52 = vrot.slane %v5350_v50, %v5862_v9  ;;  %v5959_v53 = vrot.slane %v5350_v50, %v5864_v10  ;;  %v5962_v54 = vrot.slane %v5350_v50, %v5868_v12 }
   0x9   :  { %v5965_v55 = vrot.slane %v5350_v50, %v5866_v11  ;;  %vm305_vm6 = vcmask 924672   ;;  %vm352_vm7 = vcmask 916480   ;;  %vm399_vm8 = vcmask 908288  }
   0xa   :  { %61 = vrot.lane.b32.xlu1 %v5797_v4, %s5710_s22  ;;  %55 = vrot.lane.b32.xlu0 %v5776_v0, %s5710_s22  ;;  %vm3718_vm9 = vcmask 195584   ;;  %vm5191_vm10 = vcmask 261120  }
   0xe   :  { %65 = vrot.lane.b32.xlu1 %v5792_v3, %s5710_s22  ;;  %63 = vrot.lane.b32.xlu0 %v5781_v1, %s5710_s22 }
  0x12   :  { %155 = vrot.lane.b32.xlu1 %v5797_v4, %s5711_s23  ;;  %152 = vrot.lane.b32.xlu0 %v5776_v0, %s5711_s23 }
  0x16   :  { %159 = vrot.lane.b32.xlu1 %v5792_v3, %s5711_s23  ;;  %157 = vrot.lane.b32.xlu0 %v5781_v1, %s5711_s23 }
  0x1a   :  { %202 = vrot.lane.b32.xlu1 %v5797_v4, %s5712_s24  ;;  %199 = vrot.lane.b32.xlu0 %v5776_v0, %s5712_s24 }
  0x1e   :  { %206 = vrot.lane.b32.xlu1 %v5792_v3, %s5712_s24  ;;  %204 = vrot.lane.b32.xlu0 %v5781_v1, %s5712_s24 }
  0x22   :  { %250 = vrot.lane.b32.xlu0 %v5797_v4, %s5713_s25  ;;  %252 = vrot.lane.b32.xlu1 %v5781_v1, %s5713_s25 }
  0x26   :  { %254 = vrot.lane.b32.xlu0 %v5792_v3, %s5713_s25  ;;  %256 = vrot.lane.b32.xlu1 %v5776_v0, %s5713_s25 }
  0x2a   :  { %297 = vrot.lane.b32.xlu0 %v5797_v4, %s5714_s26  ;;  %299 = vrot.lane.b32.xlu1 %v5781_v1, %s5714_s26 }
  0x2e   :  { %301 = vrot.lane.b32.xlu0 %v5792_v3, %s5714_s26  ;;  %303 = vrot.lane.b32.xlu1 %v5776_v0, %s5714_s26 }
  0x32   :  { %344 = vrot.lane.b32.xlu0 %v5797_v4, %s5715_s27  ;;  %346 = vrot.lane.b32.xlu1 %v5781_v1, %s5715_s27 }
  0x36   :  { %348 = vrot.lane.b32.xlu0 %v5792_v3, %s5715_s27  ;;  %350 = vrot.lane.b32.xlu1 %v5776_v0, %s5715_s27 }
  0x3a   :  { %391 = vrot.lane.b32.xlu0 %v5797_v4, %s5716_s28  ;;  %393 = vrot.lane.b32.xlu1 %v5781_v1, %s5716_s28 }
  0x3e   :  { %395 = vrot.lane.b32.xlu0 %v5792_v3, %s5716_s28  ;;  %397 = vrot.lane.b32.xlu1 %v5776_v0, %s5716_s28 }
  0x42   :  { %1828 = vperm.xlu0 %5702, %v1825_v6  }
  0x74   :  { %v106_v14 = vpop.permute.xlu0 %105  ;;  %v111_v15 = vpop.permute.xlu1 %110 }
  0x78   :  { %v113_v20 = vpop.permute.xlu1 %112  ;;  %v109_v21 = vpop.permute.xlu0 %108 }
  0x79   :  { %v116_v22 = vsel %vm114_vm0, %v111_v15, %v113_v20  ;;  %v117_v23 = vsel %vm114_vm0, %v113_v20, %v106_v14  ;;  %v115_v24 = vsel %vm114_vm0, %v109_v21, %v111_v15  ;;  %v122_v25 = vsel %vm114_vm0, %v106_v14, %v109_v21 }
  0x7a   :  { %v5890_v26 = vmul.f32 %v5874_v16, %v117_v23  ;;  %v5893_v27 = vmul.f32 %v5877_v17, %v115_v24  ;;  %v5896_v28 = vmul.f32 %v5880_v18, %v122_v25  ;;  %v5899_v29 = vmul.f32 %v5883_v19, %v116_v22 }
  0x7b   :  { %v5998_v15 = vrot.slane %v5351_v13, %v5862_v9  ;;  %v6001_v20 = vrot.slane %v5351_v13, %v5864_v10  ;;  %v6004_v21 = vrot.slane %v5351_v13, %v5868_v12  ;;  %v6007_v22 = vrot.slane %v5351_v13, %v5866_v11 }
  0x7c   :  { %524 = vmatprep.subr.mxu1 %v5890_v26  ;;  %v62_v31 = vpop.permute.xlu1 %61  ;;  %453 = vmatprep.subr.mxu0 %v5893_v27  ;;  %v56_v33 = vpop.permute.xlu0 %55 }
  0x7d   :  { %454 = vmatpush1.msra.mxu0 %v5896_v28  ;;  %525 = vmatpush1.msra.mxu1 %v5899_v29  ;;  %v75_v38 = vsel %vm67_vm2, %v56_v33, %v62_v31 }
  0x7e   :  { %5357 = vmatmul.mubr.msk.f32.vlgmr.msra.gmra.mrb[0].mxu0 %vm449_vm1, %v5356_v30  ;;  %5358 = vmatmul.mubr.msk.f32.vlgmr.msra.gmra.mrb[0].mxu1 %vm449_vm1, %v5356_v30  ;;  %v5941_v47 = vmul.f32 %v5923_v37, %v75_v38 }
  0x7f   :  { %662 = vmatprep.mubr.f32.mxu0 %v6859_v2  ;;  %733 = vmatprep.mubr.f32.mxu1 %v6859_v2 }
  0x80   :  { %v66_v39 = vpop.permute.xlu1 %65  ;;  %v64_v40 = vpop.permute.xlu0 %63 }
  0x81   :  { %v70_v41 = vsel %vm67_vm2, %v66_v39, %v56_v33  ;;  %v68_v42 = vsel %vm67_vm2, %v62_v31, %v64_v40  ;;  %v69_v43 = vsel %vm67_vm2, %v64_v40, %v66_v39 }
  0x82   :  { %v5932_v44 = vmul.f32 %v5914_v34, %v70_v41  ;;  %v5935_v45 = vmul.f32 %v5917_v35, %v68_v42  ;;  %v5938_v46 = vmul.f32 %v5920_v36, %v69_v43  ;;  %v5364_v41 = vld [vmem:[%s6850_s2 + $0x18] sm:$0xff] }
  0x83   :  { %v5352_v42 = vld [vmem:[%s6849_s1 + $0x5] ss:$8 sm:$0xf] }
  0x84   :  { %v156_v49 = vpop.permute.xlu1 %155  ;;  %598 = vmatprep.subr.mxu0 %v5935_v45  ;;  %669 = vmatprep.subr.mxu1 %v5932_v44  ;;  %v153_v51 = vpop.permute.xlu0 %152  ;;  %v6043_v50 = vrot.slane %v5352_v42, %v5862_v9 }
  0x85   :  { %599 = vmatpush1.msra.mxu0 %v5941_v47  ;;  %670 = vmatpush1.msra.mxu1 %v5938_v46  ;;  %v169_v56 = vsel %vm161_vm3, %v153_v51, %v156_v49 }
  0x86   :  { %5359 = vmatmul.mubr.msk.f32.vlgmr.msra.gmra.mrb[0].mxu0 %vm449_vm1, %v438_v48  ;;  %5360 = vmatmul.mubr.msk.f32.vlgmr.msra.gmra.mrb[0].mxu1 %vm449_vm1, %v438_v48  ;;  %v5983_v6 = vmul.f32 %v5965_v55, %v169_v56  ;;  %v6049_v56 = vrot.slane %v5352_v42, %v5868_v12 }
  0x87   :  { %813 = vmatprep.mubr.f32.mxu0 %v6859_v2  ;;  %884 = vmatprep.mubr.f32.mxu1 %v6859_v2 }
  0x88   :  { %v160_v57 = vpop.permute.xlu1 %159  ;;  %v158_v58 = vpop.permute.xlu0 %157 }
  0x89   :  { %v164_v59 = vsel %vm161_vm3, %v160_v57, %v153_v51  ;;  %v162_v60 = vsel %vm161_vm3, %v156_v49, %v158_v58  ;;  %v163_v61 = vsel %vm161_vm3, %v158_v58, %v160_v57  ;;  %v6040_v49 = vrot.slane %v5352_v42, %v5864_v10 }
  0x8a   :  { %v5974_v62 = vmul.f32 %v5956_v52, %v164_v59  ;;  %v5977_v63 = vmul.f32 %v5959_v53, %v162_v60  ;;  %v5980_v5 = vmul.f32 %v5962_v54, %v163_v61  ;;  %v6046_v51 = vrot.slane %v5352_v42, %v5866_v11 }
  0x8c   :  { %v203_v8 = vpop.permute.xlu1 %202  ;;  %749 = vmatprep.subr.mxu0 %v5977_v63  ;;  %820 = vmatprep.subr.mxu1 %v5974_v62  ;;  %v200_v14 = vpop.permute.xlu0 %199  ;;  %6904 = vst [vmem:[#allocation4_spill] sm:$0xff] %v6046_v51 }
  0x8d   :  { %750 = vmatpush1.msra.mxu0 %v5983_v6  ;;  %821 = vmatpush1.msra.mxu1 %v5980_v5  ;;  %v216_v23 = vsel %vm208_vm4, %v200_v14, %v203_v8 }
  0x8e   :  { %5362 = vmatmul.mubr.msk.f32.vlgmr.msra.gmra.mrb[0].mxu0 %vm449_vm1, %v5361_v7  ;;  %5363 = vmatmul.mubr.msk.f32.vlgmr.msra.gmra.mrb[0].mxu1 %vm449_vm1, %v5361_v7  ;;  %v6025_v40 = vmul.f32 %v6007_v22, %v216_v23 }
  0x8f   :  { %968 = vmatprep.mubr.f32.mxu0 %v6859_v2  ;;  %1039 = vmatprep.mubr.f32.mxu1 %v6859_v2 }
  0x90   :  { %v207_v24 = vpop.permute.xlu1 %206  ;;  %v205_v25 = vpop.permute.xlu0 %204 }
  0x91   :  { %v211_v30 = vsel %vm208_vm4, %v207_v24, %v200_v14  ;;  %v209_v31 = vsel %vm208_vm4, %v203_v8, %v205_v25  ;;  %v210_v32 = vsel %vm208_vm4, %v205_v25, %v207_v24  ;;  %v5367_v24 = vld [vmem:[%s6850_s2 + $0x20] sm:$0xff] }
  0x92   :  { %v6016_v33 = vmul.f32 %v5998_v15, %v211_v30  ;;  %v6019_v38 = vmul.f32 %v6001_v20, %v209_v31  ;;  %v6022_v39 = vmul.f32 %v6004_v21, %v210_v32  ;;  %v5353_v25 = vld [vmem:[%s6849_s1 + $0x6] ss:$8 sm:$0xf] }
  0x93   :  { %v6084_v32 = vrot.slane %v5353_v25, %v5864_v10  ;;  %v6090_v42 = vrot.slane %v5353_v25, %v5866_v11 }
  0x94   :  { %904 = vmatprep.subr.mxu0 %v6019_v38  ;;  %975 = vmatprep.subr.mxu1 %v6016_v33  ;;  %v251_v43 = vpop.permute.xlu0 %250  ;;  %v253_v48 = vpop.permute.xlu1 %252 }
  0x95   :  { %905 = vmatpush1.msra.mxu0 %v6025_v40  ;;  %976 = vmatpush1.msra.mxu1 %v6022_v39  ;;  %v259_v57 = vsel %vm258_vm5, %v251_v43, %v253_v48  ;;  %6907 = vst [vmem:[#allocation7_spill] sm:$0xff] %v6084_v32  ;;  %6909 = vst [vmem:[#allocation9_spill] sm:$0xff] %v6090_v42 }
  0x96   :  { %5365 = vmatmul.mubr.msk.f32.vlgmr.msra.gmra.mrb[0].mxu0 %vm449_vm1, %v5364_v41  ;;  %5366 = vmatmul.mubr.msk.f32.vlgmr.msra.gmra.mrb[0].mxu1 %vm449_vm1, %v5364_v41  ;;  %v6068_v14 = vmul.f32 %v6046_v51, %v259_v57  ;;  %v6087_v41 = vrot.slane %v5353_v25, %v5862_v9 }
  0x97   :  { %1059 = vmatprep.subr.mxu0 %v5781_v1  ;;  %1130 = vmatprep.subr.mxu1 %v5776_v0 }
  0x98   :  { %v255_v58 = vpop.permute.xlu0 %254  ;;  %v257_v59 = vpop.permute.xlu1 %256  ;;  %1060 = vmatpush1.msra.mxu0 %v5797_v4  ;;  %1123 = vmatprep.mubr.f32.mxu0 %v6859_v2  ;;  %6905 = vst [vmem:[#allocation5_spill] sm:$0xff] %v6068_v14  ;;  %6908 = vst [vmem:[#allocation8_spill] sm:$0xff] %v6087_v41 }
  0x99   :  { %v260_v60 = vsel %vm258_vm5, %v253_v48, %v255_v58  ;;  %v261_v61 = vsel %vm258_vm5, %v255_v58, %v257_v59  ;;  %v267_v7 = vsel %vm258_vm5, %v257_v59, %v251_v43  ;;  %1131 = vmatpush1.msra.mxu1 %v5792_v3  ;;  %1194 = vmatprep.mubr.f32.mxu1 %v6859_v2 }
  0x9a   :  { %v6062_v8 = vmul.f32 %v6040_v49, %v260_v60  ;;  %v6065_v13 = vmul.f32 %v6043_v50, %v267_v7  ;;  %v6071_v23 = vmul.f32 %v6049_v56, %v261_v61  ;;  %v6094_v43 = vrot.slane %v5353_v25, %v5868_v12 }
  0x9c   :  { %6906 = vst [vmem:[#allocation6_spill] sm:$0xff] %v6071_v23  ;;  %1214 = vmatprep.subr.mxu0 %v6062_v8  ;;  %v298_v30 = vpop.permute.xlu0 %297  ;;  %v300_v31 = vpop.permute.xlu1 %299  ;;  %1285 = vmatprep.subr.mxu1 %v6065_v13  ;;  %6910 = vst [vmem:[#allocation10_spill] sm:$0xff] %v6094_v43 }
  0x9d   :  { %v306_v48 = vsel %vm305_vm6, %v298_v30, %v300_v31 }
  0x9e   :  { %5368 = vmatmul.mubr.msk.f32.vlgmr.msra.gmra.mrb[0].mxu0 %vm449_vm1, %v5367_v24  ;;  %5369 = vmatmul.mubr.msk.f32.vlgmr.msra.gmra.mrb[0].mxu1 %vm449_vm1, %v5367_v24  ;;  %v6110_v25 = vmul.f32 %v6090_v42, %v306_v48 }
  0x9f   :  { %1215 = vmatpush1.msra.mxu0 %v6068_v14  ;;  %1286 = vmatpush1.msra.mxu1 %v6071_v23 }
  0xa0   :  { %v302_v57 = vpop.permute.xlu0 %301  ;;  %v304_v58 = vpop.permute.xlu1 %303  ;;  %1278 = vmatprep.mubr.f32.mxu0 %v6859_v2  ;;  %1349 = vmatprep.mubr.f32.mxu1 %v6859_v2  ;;  %6913 = vst [vmem:[#allocation13_spill] sm:$0xff] %v6110_v25 }
  0xa1   :  { %v307_v59 = vsel %vm305_vm6, %v300_v31, %v302_v57  ;;  %v308_v60 = vsel %vm305_vm6, %v302_v57, %v304_v58  ;;  %v314_v61 = vsel %vm305_vm6, %v304_v58, %v298_v30  ;;  %v5370_v31 = vld [vmem:[%s6850_s2 + $0x28] sm:$0xff] }
  0xa2   :  { %v6104_v7 = vmul.f32 %v6084_v32, %v307_v59  ;;  %v6107_v24 = vmul.f32 %v6087_v41, %v314_v61  ;;  %v6113_v23 = vmul.f32 %v6094_v43, %v308_v60  ;;  %v5354_v30 = vld [vmem:[%s6849_s1 + $0x7] ss:$8 sm:$0xf] }
  0xa3   :  { %v6126_v48 = vrot.slane %v5354_v30, %v5864_v10  ;;  %v6129_v59 = vrot.slane %v5354_v30, %v5862_v9  ;;  %v6132_v60 = vrot.slane %v5354_v30, %v5866_v11  ;;  %v6136_v61 = vrot.slane %v5354_v30, %v5868_v12 }
  0xa4   :  { %6911 = vst [vmem:[#allocation11_spill] sm:$0xff] %v6104_v7  ;;  %6912 = vst [vmem:[#allocation12_spill] sm:$0xff] %v6107_v24  ;;  %1369 = vmatprep.subr.mxu0 %v6104_v7  ;;  %v345_v57 = vpop.permute.xlu0 %344  ;;  %v347_v58 = vpop.permute.xlu1 %346  ;;  %1440 = vmatprep.subr.mxu1 %v6107_v24  ;;  %v6919_v24 = vmov 0.0  }
  0xa5   :  { %6914 = vst [vmem:[#allocation14_spill] sm:$0xff] %v6113_v23  ;;  %6915 = vst [vmem:[#allocation15_spill] sm:$0xff] %v6126_v48  ;;  %v353_v2 = vsel %vm352_vm7, %v345_v57, %v347_v58 }
  0xa6   :  { %5371 = vmatmul.mubr.msk.f32.vlgmr.msra.gmra.mrb[0].mxu0 %vm449_vm1, %v5370_v31  ;;  %5372 = vmatmul.mubr.msk.f32.vlgmr.msra.gmra.mrb[0].mxu1 %vm449_vm1, %v5370_v31  ;;  %6916 = vst [vmem:[#allocation16_spill] sm:$0xff] %v6129_v59  ;;  %6917 = vst [vmem:[#allocation17_spill] sm:$0xff] %v6132_v60 }
  0xa7   :  { %1370 = vmatpush1.msra.mxu0 %v6110_v25  ;;  %6918 = vst [vmem:[#allocation18_spill] sm:$0xff] %v6136_v61  ;;  %1441 = vmatpush1.msra.mxu1 %v6113_v23  ;;  %v6152_v23 = vmul.f32 %v6132_v60, %v353_v2 }
  0xa8   :  { %v349_v43 = vpop.permute.xlu0 %348  ;;  %v351_v31 = vpop.permute.xlu1 %350  ;;  %1433 = vmatprep.mubr.f32.mxu0 %v6919_v24  ;;  %1504 = vmatprep.mubr.f32.mxu1 %v6919_v24 }
  0xa9   :  { %v354_v42 = vsel %vm352_vm7, %v347_v58, %v349_v43  ;;  %v355_v41 = vsel %vm352_vm7, %v349_v43, %v351_v31  ;;  %v361_v7 = vsel %vm352_vm7, %v351_v31, %v345_v57  ;;  %6921 = vst [vmem:[#allocation20_spill] sm:$0xff] %v6152_v23  ;;  %v5373_v58 = vld [vmem:[%s6850_s2 + $0x30] sm:$0xff] }
  0xaa   :  { %v6146_v25 = vmul.f32 %v6126_v48, %v354_v42  ;;  %v6149_v30 = vmul.f32 %v6129_v59, %v361_v7  ;;  %v6155_v14 = vmul.f32 %v6136_v61, %v355_v41  ;;  %v5355_v43 = vld [vmem:[%s6849_s1 + $0x20] ss:$8 sm:$0xf] }
  0xab   :  { %v6168_v2 = vrot.slane %v5355_v43, %v5864_v10  ;;  %v6171_v41 = vrot.slane %v5355_v43, %v5862_v9  ;;  %v6174_v7 = vrot.slane %v5355_v43, %v5866_v11  ;;  %v6178_v31 = vrot.slane %v5355_v43, %v5868_v12 }
  0xac   :  { %6920 = vst [vmem:[#allocation19_spill] sm:$0xff] %v6149_v30  ;;  %6922 = vst [vmem:[#allocation21_spill] sm:$0xff] %v6155_v14  ;;  %1524 = vmatprep.subr.mxu0 %v6146_v25  ;;  %v392_v42 = vpop.permute.xlu0 %391  ;;  %v394_v57 = vpop.permute.xlu1 %393  ;;  %1595 = vmatprep.subr.mxu1 %v6149_v30 }
  0xad   :  { %6923 = vst [vmem:[#allocation22_spill] sm:$0xff] %v6168_v2  ;;  %6924 = vst [vmem:[#allocation23_spill] sm:$0xff] %v6171_v41  ;;  %v400_v61 = vsel %vm399_vm8, %v392_v42, %v394_v57 }
  0xae   :  { %5374 = vmatmul.mubr.msk.f32.vlgmr.msra.gmra.mrb[0].mxu0 %vm449_vm1, %v5373_v58  ;;  %5375 = vmatmul.mubr.msk.f32.vlgmr.msra.gmra.mrb[0].mxu1 %vm449_vm1, %v5373_v58  ;;  %6925 = vst [vmem:[#allocation24_spill] sm:$0xff] %v6174_v7  ;;  %6926 = vst [vmem:[#allocation25_spill] sm:$0xff] %v6178_v31  ;;  %v6194_v43 = vmul.f32 %v6174_v7, %v400_v61  ;;  %v5379_v61 = vld [vmem:[%s6850_s2 + $0x40] sm:$0xff] }
  0xaf   :  { %1525 = vmatpush1.msra.mxu0 %v6152_v23  ;;  %1596 = vmatpush1.msra.mxu1 %v6155_v14 }
  0xb0   :  { %v396_v30 = vpop.permute.xlu0 %395  ;;  %v398_v58 = vpop.permute.xlu1 %397  ;;  %1588 = vmatprep.mubr.f32.mxu0 %v6919_v24  ;;  %1659 = vmatprep.mubr.f32.mxu1 %v6919_v24  ;;  %6929 = vst [vmem:[#allocation28_spill] sm:$0xff] %v6194_v43 }
  0xb1   :  { %v401_v9 = vsel %vm399_vm8, %v394_v57, %v396_v30  ;;  %v402_v10 = vsel %vm399_vm8, %v396_v30, %v398_v58  ;;  %v408_v11 = vsel %vm399_vm8, %v398_v58, %v392_v42  ;;  %v5376_v57 = vld [vmem:[%s6850_s2 + $0x38] sm:$0xff] }
  0xb2   :  { %v6188_v23 = vmul.f32 %v6168_v2, %v401_v9  ;;  %v6191_v12 = vmul.f32 %v6171_v41, %v408_v11  ;;  %v6197_v14 = vmul.f32 %v6178_v31, %v402_v10 }
  0xb4   :  { %6927 = vst [vmem:[#allocation26_spill] sm:$0xff] %v6188_v23  ;;  %6928 = vst [vmem:[#allocation27_spill] sm:$0xff] %v6191_v12  ;;  %1679 = vmatprep.subr.mxu0 %v6188_v23  ;;  %1750 = vmatprep.subr.mxu1 %v6191_v12 }
  0xb5   :  { %6930 = vst [vmem:[#allocation29_spill] sm:$0xff] %v6197_v14 }
  0xb6   :  { %5377 = vmatmul.mubr.msk.f32.vlgmr.msra.gmra.mrb[0].mxu0 %vm449_vm1, %v5376_v57  ;;  %5378 = vmatmul.mubr.msk.f32.vlgmr.msra.gmra.mrb[0].mxu1 %vm449_vm1, %v5376_v57 }
  0xb7   :  { %1680 = vmatpush1.msra.mxu0 %v6194_v43  ;;  %1751 = vmatpush1.msra.mxu1 %v6197_v14 }
  0xb8   :  { %1743 = vmatprep.mubr.f32.mxu0 %v6919_v24  ;;  %1814 = vmatprep.mubr.f32.mxu1 %v6919_v24 }
  0xbe   :  { %5380 = vmatmul.mubr.msk.f32.vlgmr.msra.gmra.mrb[0].mxu0 %vm449_vm1, %v5379_v61  ;;  %5381 = vmatmul.mubr.msk.f32.vlgmr.msra.gmra.mrb[0].mxu1 %vm449_vm1, %v5379_v61 }
  0xbf   :  { %2133 = vmatprep.mubr.f32.mxu0 %v6919_v24  ;;  %2204 = vmatprep.mubr.f32.mxu1 %v6919_v24 }
  0xc1   :  { %v1829_v30 = vpop.permute.xlu0 %1828 }
 0x191   :  { %v1745_v42 = vpop.f32.mrb[0].mxu0  ;;  %v1816_v58 = vpop.f32.mrb[0].mxu1 }
 0x192   :  { %v1831_v9 = vadd.f32 %v1829_v30, %v1745_v42  ;;  %v1747_v10 = vpop.f32.mrb[1].mxu0  ;;  %v1818_v11 = vpop.f32.mrb[1].mxu1  ;;  %v1833_v14 = vadd.f32 %v1829_v30, %v1816_v58 }
 0x193   :  { %v1832_v57 = vadd.f32 %v1829_v30, %v1747_v10  ;;  %v1834_v12 = vadd.f32 %v1829_v30, %v1818_v11 }
 0x194   :  { %v6217_v43 = vmax.f32 %v1831_v9, 0.0  ;;  %v6225_v61 = vmax.f32 %v1833_v14, 0.0  ;;  %v3469_v14 = vld [vmem:[%s6851_s5] sm:$0xff] }
 0x195   :  { %v6219_v31 = vmax.f32 %v1832_v57, 0.0  ;;  %v6227_v7 = vmax.f32 %v1834_v12, 0.0 }
 0x196   :  { %1875 = vrot.lane.b32.xlu1 %v6217_v43, %s5709_s17 }
 0x197   :  { %1877 = vrot.lane.b32.xlu0 %v6219_v31, %s5709_s17 }
 0x19a   :  { %1879 = vrot.lane.b32.xlu1 %v6225_v61, %s5709_s17 }
 0x19b   :  { %1844 = vrot.lane.b32.xlu0 %v6227_v7, %s5710_s22 }
 0x19e   :  { %1872 = vrot.lane.b32.xlu1 %v6227_v7, %s5709_s17 }
 0x19f   :  { %1852 = vrot.lane.b32.xlu0 %v6219_v31, %s5710_s22 }
 0x1a2   :  { %1850 = vrot.lane.b32.xlu1 %v6217_v43, %s5710_s22 }
 0x1a3   :  { %1897 = vrot.lane.b32.xlu0 %v6227_v7, %s5711_s23 }
 0x1a6   :  { %1854 = vrot.lane.b32.xlu1 %v6225_v61, %s5710_s22 }
 0x1a7   :  { %1902 = vrot.lane.b32.xlu0 %v6219_v31, %s5711_s23 }
 0x1aa   :  { %1900 = vrot.lane.b32.xlu1 %v6217_v43, %s5711_s23 }
 0x1ab   :  { %1922 = vrot.lane.b32.xlu0 %v6227_v7, %s5712_s24 }
 0x1ae   :  { %1904 = vrot.lane.b32.xlu1 %v6225_v61, %s5711_s23 }
 0x1af   :  { %1927 = vrot.lane.b32.xlu0 %v6219_v31, %s5712_s24 }
 0x1b2   :  { %1925 = vrot.lane.b32.xlu1 %v6217_v43, %s5712_s24 }
 0x1b3   :  { %1947 = vrot.lane.b32.xlu0 %v6217_v43, %s5713_s25 }
 0x1b6   :  { %1929 = vrot.lane.b32.xlu1 %v6225_v61, %s5712_s24 }
 0x1b7   :  { %1951 = vrot.lane.b32.xlu0 %v6225_v61, %s5713_s25 }
 0x1ba   :  { %1949 = vrot.lane.b32.xlu1 %v6219_v31, %s5713_s25 }
 0x1bb   :  { %1972 = vrot.lane.b32.xlu0 %v6217_v43, %s5714_s26 }
 0x1be   :  { %1953 = vrot.lane.b32.xlu1 %v6227_v7, %s5713_s25 }
 0x1bf   :  { %1976 = vrot.lane.b32.xlu0 %v6225_v61, %s5714_s26 }
 0x1c2   :  { %1974 = vrot.lane.b32.xlu1 %v6219_v31, %s5714_s26 }
 0x1c3   :  { %1997 = vrot.lane.b32.xlu0 %v6217_v43, %s5715_s27 }
 0x1c6   :  { %1978 = vrot.lane.b32.xlu1 %v6227_v7, %s5714_s26 }
 0x1c7   :  { %2001 = vrot.lane.b32.xlu0 %v6225_v61, %s5715_s27 }
 0x1ca   :  { %1999 = vrot.lane.b32.xlu1 %v6219_v31, %s5715_s27 }
 0x1cb   :  { %2022 = vrot.lane.b32.xlu0 %v6217_v43, %s5716_s28 }
 0x1ce   :  { %2003 = vrot.lane.b32.xlu1 %v6227_v7, %s5715_s27 }
 0x1cf   :  { %2026 = vrot.lane.b32.xlu0 %v6225_v61, %s5716_s28 }
 0x1d2   :  { %2024 = vrot.lane.b32.xlu1 %v6219_v31, %s5716_s28 }
 0x1d3   :  { %3472 = vperm.xlu0 %5702, %v3469_v14  }
 0x1d6   :  { %2028 = vrot.lane.b32.xlu1 %v6227_v7, %s5716_s28 }
 0x208   :  { %v1876_v12 = vpop.permute.xlu1 %1875 }
 0x209   :  { %v1878_v30 = vpop.permute.xlu0 %1877 }
 0x20a   :  { %v1881_v42 = vsel %vm114_vm0, %v1876_v12, %v1878_v30 }
 0x20b   :  { %v1890_v58 = vmul.f32 %v1881_v42, %v5877_v17 }
 0x20c   :  { %v1880_v9 = vpop.permute.xlu1 %1879 }
 0x20d   :  { %v1845_v10 = vpop.permute.xlu0 %1844  ;;  %v6295_v11 = vpack.c.bf16 %v1890_v58, %v5893_v27  ;;  %v1882_v57 = vsel %vm114_vm0, %v1878_v30, %v1880_v9 }
 0x20e   :  { %v1891_v14 = vmul.f32 %v1882_v57, %v5883_v19 }
 0x20f   :  { %5437 = vmatprep.subr.bf16.mxu0 %v6295_v11 }
 0x210   :  { %v1873_v41 = vpop.permute.xlu1 %1872  ;;  %v6311_v58 = vpack.c.bf16 %v1891_v14, %v5899_v29 }
 0x211   :  { %v1883_v23 = vsel %vm114_vm0, %v1880_v9, %v1873_v41  ;;  %v1888_v2 = vsel %vm114_vm0, %v1873_v41, %v1876_v12  ;;  %v1853_v60 = vpop.permute.xlu0 %1852 }
 0x212   :  { %v1889_v59 = vmul.f32 %v1888_v2, %v5880_v18  ;;  %v1892_v42 = vmul.f32 %v1883_v23, %v5874_v16 }
 0x214   :  { %v6305_v17 = vpack.c.bf16 %v1889_v59, %v5896_v28  ;;  %v1851_v27 = vpop.permute.xlu1 %1850  ;;  %v6308_v30 = vpack.c.bf16 %v1892_v42, %v5890_v26  ;;  %v5382_v26 = vld [vmem:[%s6852_s4 + $0x8] sm:$0xff] }
 0x215   :  { %v1856_v57 = vsel %vm67_vm2, %v1851_v27, %v1853_v60  ;;  %v1863_v9 = vsel %vm67_vm2, %v1845_v10, %v1851_v27  ;;  %v1898_v41 = vpop.permute.xlu0 %1897 }
 0x216   :  { %v1864_v12 = vmul.f32 %v1863_v9, %v5923_v37  ;;  %v1865_v2 = vmul.f32 %v1856_v57, %v5917_v35  ;;  %5439 = vmatpush1.bf16.msra.mxu0 %v6305_v17  ;;  %5441 = vmatprep.subr.bf16.mxu1 %v6308_v30 }
 0x217   :  { %5443 = vmatpush1.bf16.msra.mxu1 %v6311_v58 }
 0x218   :  { %v6324_v28 = vpack.c.bf16 %v1864_v12, %v5941_v47  ;;  %v1855_v29 = vpop.permute.xlu1 %1854  ;;  %v6327_v23 = vpack.c.bf16 %v1865_v2, %v5935_v45 }
 0x219   :  { %v1857_v59 = vsel %vm67_vm2, %v1853_v60, %v1855_v29  ;;  %v1858_v14 = vsel %vm67_vm2, %v1855_v29, %v1845_v10  ;;  %v1903_v42 = vpop.permute.xlu0 %1902  ;;  %5383 = vmatmul.mubr.msk.f32.vlgmr.msra.gmra.mrb[2].mxu0 %vm114_vm0, %v5382_v26 }
 0x21a   :  { %v1866_v27 = vmul.f32 %v1857_v59, %v5920_v36  ;;  %v1867_v57 = vmul.f32 %v1858_v14, %v5914_v34  ;;  %5384 = vmatmul.mubr.msk.f32.vlgmr.msra.gmra.mrb[2].mxu1 %vm114_vm0, %v5382_v26  ;;  %5445 = vmatprep.subr.bf16.mxu0 %v6327_v23 }
 0x21b   :  { %5447 = vmatpush1.bf16.msra.mxu0 %v6324_v28  ;;  %2278 = vmatprep.mubr.f32.mxu0 %v6919_v24 }
 0x21c   :  { %v6339_v45 = vpack.c.bf16 %v1866_v27, %v5938_v46  ;;  %v1901_v47 = vpop.permute.xlu1 %1900  ;;  %v6342_v60 = vpack.c.bf16 %v1867_v57, %v5932_v44  ;;  %2349 = vmatprep.mubr.f32.mxu1 %v6919_v24  ;;  %v2047_v46 = vld [vmem:[%s6852_s4] sm:$0xff] }
 0x21d   :  { %v1906_v10 = vsel %vm161_vm3, %v1901_v47, %v1903_v42  ;;  %v1913_v9 = vsel %vm161_vm3, %v1898_v41, %v1901_v47  ;;  %v1923_v12 = vpop.permute.xlu0 %1922 }
 0x21e   :  { %v1914_v2 = vmul.f32 %v1913_v9, %v5965_v55  ;;  %v1915_v26 = vmul.f32 %v1906_v10, %v5959_v53  ;;  %5449 = vmatprep.subr.bf16.mxu1 %v6342_v60 }
 0x21f   :  { %5451 = vmatpush1.bf16.msra.mxu1 %v6339_v45 }
 0x220   :  { %v6355_v44 = vpack.c.bf16 %v1914_v2, %v5983_v6  ;;  %v1905_v29 = vpop.permute.xlu1 %1904  ;;  %v6358_v59 = vpack.c.bf16 %v1915_v26, %v5977_v63 }
 0x221   :  { %v1907_v14 = vsel %vm161_vm3, %v1903_v42, %v1905_v29  ;;  %v1908_v27 = vsel %vm161_vm3, %v1905_v29, %v1898_v41  ;;  %v1928_v57 = vpop.permute.xlu0 %1927  ;;  %5385 = vmatmul.mubr.msk.f32.vlgmr.msra.gmra.mrb[2].mxu0 %vm114_vm0, %v2047_v46 }
 0x222   :  { %v1916_v47 = vmul.f32 %v1907_v14, %v5962_v54  ;;  %v1917_v10 = vmul.f32 %v1908_v27, %v5956_v52  ;;  %5386 = vmatmul.mubr.msk.f32.vlgmr.msra.gmra.mrb[2].mxu1 %vm114_vm0, %v2047_v46  ;;  %5453 = vmatprep.subr.bf16.mxu0 %v6358_v59 }
 0x223   :  { %5455 = vmatpush1.bf16.msra.mxu0 %v6355_v44  ;;  %2433 = vmatprep.mubr.f32.mxu0 %v6919_v24 }
 0x224   :  { %v6370_v63 = vpack.c.bf16 %v1916_v47, %v5980_v5  ;;  %v1926_v6 = vpop.permute.xlu1 %1925  ;;  %v6373_v41 = vpack.c.bf16 %v1917_v10, %v5974_v62  ;;  %2504 = vmatprep.mubr.f32.mxu1 %v6919_v24  ;;  %v5387_v5 = vld [vmem:[%s6852_s4 + $0x10] sm:$0xff] }
 0x225   :  { %v1931_v42 = vsel %vm208_vm4, %v1926_v6, %v1928_v57  ;;  %v1938_v9 = vsel %vm208_vm4, %v1923_v12, %v1926_v6  ;;  %v1948_v2 = vpop.permute.xlu0 %1947 }
 0x226   :  { %v1939_v26 = vmul.f32 %v1938_v9, %v6007_v22  ;;  %v1940_v46 = vmul.f32 %v1931_v42, %v6001_v20  ;;  %5457 = vmatprep.subr.bf16.mxu1 %v6373_v41 }
 0x227   :  { %5459 = vmatpush1.bf16.msra.mxu1 %v6370_v63 }
 0x228   :  { %v6386_v62 = vpack.c.bf16 %v1939_v26, %v6025_v40  ;;  %v1930_v29 = vpop.permute.xlu1 %1929  ;;  %v6389_v14 = vpack.c.bf16 %v1940_v46, %v6019_v38  ;;  %v6400_v40 = vpack.c.bf16 %v6219_v31, %v5781_v1  ;;  %v6417_v31 = vpack.c.bf16 %v6227_v7, %v5776_v0 }
 0x229   :  { %v1932_v27 = vsel %vm208_vm4, %v1928_v57, %v1930_v29  ;;  %v1933_v47 = vsel %vm208_vm4, %v1930_v29, %v1923_v12  ;;  %v1952_v10 = vpop.permute.xlu0 %1951  ;;  %5388 = vmatmul.mubr.msk.f32.vlgmr.msra.gmra.mrb[2].mxu0 %vm114_vm0, %v5387_v5  ;;  %v6426_v46 = vpack.c.bf16 %v6217_v43, %v5797_v4 }
 0x22a   :  { %v1941_v6 = vmul.f32 %v1932_v27, %v6004_v21  ;;  %v1942_v42 = vmul.f32 %v1933_v47, %v5998_v15  ;;  %5389 = vmatmul.mubr.msk.f32.vlgmr.msra.gmra.mrb[2].mxu1 %vm114_vm0, %v5387_v5  ;;  %5461 = vmatprep.subr.bf16.mxu0 %v6389_v14  ;;  %v6436_v27 = vpack.c.bf16 %v6225_v61, %v5792_v3 }
 0x22b   :  { %5463 = vmatpush1.bf16.msra.mxu0 %v6386_v62  ;;  %2592 = vmatprep.mubr.f32.mxu0 %v6919_v24 }
 0x22c   :  { %v6405_v38 = vpack.c.bf16 %v1941_v6, %v6022_v39  ;;  %5469 = vmatprep.subr.bf16.mxu0 %v6400_v40  ;;  %v1950_v12 = vpop.permute.xlu1 %1949  ;;  %v6409_v57 = vpack.c.bf16 %v1942_v42, %v6016_v33  ;;  %2663 = vmatprep.mubr.f32.mxu1 %v6919_v24  ;;  %v5390_v39 = vld [vmem:[%s6852_s4 + $0x18] sm:$0xff]  ;;  %v5393_v42 = vld [vmem:[%s6852_s4 + $0x20] sm:$0xff] }
 0x22d   :  { %v1956_v9 = vsel %vm258_vm5, %v1950_v12, %v1952_v10  ;;  %v1973_v26 = vpop.permute.xlu0 %1972  ;;  %v1955_v29 = vsel %vm258_vm5, %v1948_v2, %v1950_v12  ;;  %v6931_v12 = vld [vmem:[#allocation5_spill] sm:$0xff] }
 0x22e   :  { %v1965_v1 = vmul.f32 %v1956_v9, %v6040_v49  ;;  %5465 = vmatprep.subr.bf16.mxu1 %v6409_v57  ;;  %v1964_v4 = vmul.f32 %v1955_v29, %v6046_v51 }
 0x22f   :  { %5467 = vmatpush1.bf16.msra.mxu1 %v6405_v38 }
 0x230   :  { %5473 = vmatprep.subr.bf16.mxu1 %v6417_v31  ;;  %v1954_v33 = vpop.permute.xlu1 %1953  ;;  %v6429_v5 = vpack.c.bf16 %v1965_v1, %v6062_v8  ;;  %v6932_v1 = vld [vmem:[#allocation11_spill] sm:$0xff] }
 0x231   :  { %v1963_v0 = vsel %vm258_vm5, %v1954_v33, %v1948_v2  ;;  %v1977_v7 = vpop.permute.xlu0 %1976  ;;  %5391 = vmatmul.mubr.msk.f32.vlgmr.msra.gmra.mrb[2].mxu0 %vm114_vm0, %v5390_v39  ;;  %v1957_v47 = vsel %vm258_vm5, %v1952_v10, %v1954_v33  ;;  %v6934_v33 = vld [vmem:[#allocation6_spill] sm:$0xff] }
 0x232   :  { %v1967_v6 = vmul.f32 %v1963_v0, %v6043_v50  ;;  %5471 = vmatpush1.bf16.msra.mxu0 %v6426_v46  ;;  %5392 = vmatmul.mubr.msk.f32.vlgmr.msra.gmra.mrb[2].mxu1 %vm114_vm0, %v5390_v39  ;;  %v1966_v3 = vmul.f32 %v1957_v47, %v6049_v56 }
 0x233   :  { %5477 = vmatprep.subr.bf16.mxu0 %v6429_v5  ;;  %5475 = vmatpush1.bf16.msra.mxu1 %v6436_v27 }
 0x234   :  { %v1975_v8 = vpop.permute.xlu1 %1974  ;;  %v6446_v43 = vpack.c.bf16 %v1967_v6, %v6065_v13  ;;  %2751 = vmatprep.mubr.f32.mxu0 %v6919_v24  ;;  %2822 = vmatprep.mubr.f32.mxu1 %v6919_v24  ;;  %v6458_v13 = vpack.c.bf16 %v1964_v4, %v6931_v12  ;;  %v6464_v29 = vpack.c.bf16 %v1966_v3, %v6934_v33  ;;  %v6936_v4 = vld [vmem:[#allocation9_spill] sm:$0xff]  ;;  %v5396_v33 = vld [vmem:[%s6852_s4 + $0x28] sm:$0xff] }
 0x235   :  { %v1981_v61 = vsel %vm305_vm6, %v1975_v8, %v1977_v7  ;;  %v1998_v2 = vpop.permute.xlu0 %1997  ;;  %v1980_v0 = vsel %vm305_vm6, %v1973_v26, %v1975_v8 }
 0x236   :  { %v1990_v10 = vmul.f32 %v1981_v61, %v6084_v32  ;;  %5481 = vmatprep.subr.bf16.mxu1 %v6446_v43  ;;  %v6935_v32 = vld [vmem:[#allocation8_spill] sm:$0xff]  ;;  %v1989_v3 = vmul.f32 %v1980_v0, %v6936_v4  ;;  %v6939_v0 = vld [vmem:[#allocation13_spill] sm:$0xff]  ;;  %v6942_v4 = vld [vmem:[#allocation14_spill] sm:$0xff] }
 0x238   :  { %v1979_v9 = vpop.permute.xlu1 %1978  ;;  %v6461_v39 = vpack.c.bf16 %v1990_v10, %v6932_v1  ;;  %v6937_v10 = vld [vmem:[#allocation12_spill] sm:$0xff] }
 0x239   :  { %v1988_v47 = vsel %vm305_vm6, %v1979_v9, %v1973_v26  ;;  %v2002_v6 = vpop.permute.xlu0 %2001  ;;  %5394 = vmatmul.mubr.msk.f32.vlgmr.msra.gmra.mrb[2].mxu0 %vm114_vm0, %v5393_v42  ;;  %v1982_v61 = vsel %vm305_vm6, %v1977_v7, %v1979_v9  ;;  %v6938_v7 = vld [vmem:[#allocation10_spill] sm:$0xff] }
 0x23a   :  { %6933 = vst [vmem:[#allocation5_spill] sm:$0xff] %v6461_v39  ;;  %v1992_v51 = vmul.f32 %v1988_v47, %v6935_v32  ;;  %5479 = vmatpush1.bf16.msra.mxu0 %v6458_v13  ;;  %5395 = vmatmul.mubr.msk.f32.vlgmr.msra.gmra.mrb[2].mxu1 %vm114_vm0, %v5393_v42  ;;  %v1991_v12 = vmul.f32 %v1982_v61, %v6938_v7  ;;  %v6943_v32 = vld [vmem:[#allocation16_spill] sm:$0xff] }
 0x23b   :  { %5483 = vmatpush1.bf16.msra.mxu1 %v6464_v29  ;;  %5485 = vmatprep.subr.bf16.mxu0 %v6461_v39 }
 0x23c   :  { %v2000_v8 = vpop.permute.xlu1 %1999  ;;  %v6477_v26 = vpack.c.bf16 %v1992_v51, %v6937_v10  ;;  %2910 = vmatprep.mubr.f32.mxu0 %v6919_v24  ;;  %2981 = vmatprep.mubr.f32.mxu1 %v6919_v24  ;;  %v6489_v51 = vpack.c.bf16 %v1989_v3, %v6939_v0  ;;  %v6495_v61 = vpack.c.bf16 %v1991_v12, %v6942_v4  ;;  %v6945_v12 = vld [vmem:[#allocation19_spill] sm:$0xff] }
 0x23d   :  { %v2006_v9 = vsel %vm352_vm7, %v2000_v8, %v2002_v6  ;;  %v2023_v1 = vpop.permute.xlu0 %2022  ;;  %v2005_v7 = vsel %vm352_vm7, %v1998_v2, %v2000_v8 }
 0x23e   :  { %v2015_v42 = vmul.f32 %v2006_v9, %v6126_v48  ;;  %5489 = vmatprep.subr.bf16.mxu1 %v6477_v26  ;;  %6940 = vst [vmem:[#allocation11_spill] sm:$0xff] %v6489_v51 }
 0x240   :  { %v2004_v47 = vpop.permute.xlu1 %2003  ;;  %v6492_v10 = vpack.c.bf16 %v2015_v42, %v6146_v25  ;;  %v6944_v25 = vld [vmem:[#allocation17_spill] sm:$0xff] }
 0x241   :  { %v2013_v9 = vsel %vm352_vm7, %v2004_v47, %v1998_v2  ;;  %5397 = vmatmul.mubr.msk.f32.vlgmr.msra.gmra.mrb[2].mxu0 %vm114_vm0, %v5396_v33  ;;  %v2007_v48 = vsel %vm352_vm7, %v2002_v6, %v2004_v47  ;;  %v2014_v4 = vmul.f32 %v2005_v7, %v6944_v25  ;;  %v2027_v3 = vpop.permute.xlu0 %2026  ;;  %v6947_v6 = vld [vmem:[#allocation18_spill] sm:$0xff]  ;;  %v5399_v7 = vld [vmem:[%s6852_s4 + $0x30] sm:$0xff] }
 0x242   :  { %6941 = vst [vmem:[#allocation6_spill] sm:$0xff] %v6492_v10  ;;  %v2017_v39 = vmul.f32 %v2013_v9, %v6943_v32  ;;  %5487 = vmatpush1.bf16.msra.mxu0 %v6489_v51  ;;  %5398 = vmatmul.mubr.msk.f32.vlgmr.msra.gmra.mrb[2].mxu1 %vm114_vm0, %v5396_v33  ;;  %v2016_v42 = vmul.f32 %v2007_v48, %v6947_v6  ;;  %v6948_v33 = vld [vmem:[#allocation22_spill] sm:$0xff]  ;;  %v6949_v9 = vld [vmem:[#allocation20_spill] sm:$0xff]  ;;  %v6952_v6 = vld [vmem:[#allocation23_spill] sm:$0xff] }
 0x243   :  { %5491 = vmatpush1.bf16.msra.mxu1 %v6495_v61  ;;  %5493 = vmatprep.subr.bf16.mxu0 %v6492_v10  ;;  %v6520_v25 = vpack.c.bf16 %v2014_v4, %v6949_v9  ;;  %v6951_v10 = vld [vmem:[#allocation21_spill] sm:$0xff] }
 0x244   :  { %v2025_v8 = vpop.permute.xlu1 %2024  ;;  %v6508_v2 = vpack.c.bf16 %v2017_v39, %v6945_v12  ;;  %3069 = vmatprep.mubr.f32.mxu0 %v6919_v24  ;;  %3140 = vmatprep.mubr.f32.mxu1 %v6919_v24  ;;  %v6950_v12 = vld [vmem:[#allocation26_spill] sm:$0xff]  ;;  %v6526_v51 = vpack.c.bf16 %v2016_v42, %v6951_v10  ;;  %v6953_v10 = vld [vmem:[#allocation24_spill] sm:$0xff]  ;;  %v6954_v42 = vld [vmem:[#allocation27_spill] sm:$0xff] }
 0x245   :  { %v2031_v0 = vsel %vm399_vm8, %v2025_v8, %v2027_v3  ;;  %v2030_v48 = vsel %vm399_vm8, %v2023_v1, %v2025_v8 }
 0x246   :  { %6946 = vst [vmem:[#allocation12_spill] sm:$0xff] %v6508_v2  ;;  %v2040_v47 = vmul.f32 %v2031_v0, %v6948_v33  ;;  %5497 = vmatprep.subr.bf16.mxu1 %v6508_v2  ;;  %v2039_v4 = vmul.f32 %v2030_v48, %v6953_v10 }
 0x248   :  { %v2029_v39 = vpop.permute.xlu1 %2028  ;;  %v6523_v32 = vpack.c.bf16 %v2040_v47, %v6950_v12  ;;  %v5402_v47 = vld [vmem:[%s6852_s4 + $0x38] sm:$0xff] }
 0x249   :  { %v2038_v0 = vsel %vm399_vm8, %v2029_v39, %v2023_v1  ;;  %5400 = vmatmul.mubr.msk.f32.vlgmr.msra.gmra.mrb[2].mxu0 %vm114_vm0, %v5399_v7  ;;  %v2032_v33 = vsel %vm399_vm8, %v2027_v3, %v2029_v39  ;;  %v6955_v1 = vld [vmem:[#allocation25_spill] sm:$0xff] }
 0x24a   :  { %v2042_v2 = vmul.f32 %v2038_v0, %v6952_v6  ;;  %5495 = vmatpush1.bf16.msra.mxu0 %v6520_v25  ;;  %5401 = vmatmul.mubr.msk.f32.vlgmr.msra.gmra.mrb[2].mxu1 %vm114_vm0, %v5399_v7  ;;  %v2041_v3 = vmul.f32 %v2032_v33, %v6955_v1  ;;  %v6956_v7 = vld [vmem:[#allocation28_spill] sm:$0xff]  ;;  %v6958_v39 = vld [vmem:[#allocation29_spill] sm:$0xff] }
 0x24b   :  { %5499 = vmatpush1.bf16.msra.mxu1 %v6526_v51  ;;  %5501 = vmatprep.subr.bf16.mxu0 %v6523_v32  ;;  %v6549_v9 = vpack.c.bf16 %v2039_v4, %v6956_v7 }
 0x24c   :  { %v6539_v8 = vpack.c.bf16 %v2042_v2, %v6954_v42  ;;  %3228 = vmatprep.mubr.f32.mxu0 %v6919_v24  ;;  %3299 = vmatprep.mubr.f32.mxu1 %v6919_v24  ;;  %v6552_v12 = vpack.c.bf16 %v2041_v3, %v6958_v39  ;;  %v5405_v2 = vld [vmem:[%s6852_s4 + $0x40] sm:$0xff] }
 0x24d   :  { %6957 = vst [vmem:[#allocation13_spill] sm:$0xff] %v6549_v9 }
 0x24e   :  { %5505 = vmatprep.subr.bf16.mxu1 %v6539_v8  ;;  %6959 = vst [vmem:[#allocation14_spill] sm:$0xff] %v6552_v12 }
 0x251   :  { %5403 = vmatmul.mubr.msk.f32.vlgmr.msra.gmra.mrb[2].mxu0 %vm114_vm0, %v5402_v47 }
 0x252   :  { %5503 = vmatpush1.bf16.msra.mxu0 %v6549_v9  ;;  %5404 = vmatmul.mubr.msk.f32.vlgmr.msra.gmra.mrb[2].mxu1 %vm114_vm0, %v5402_v47 }
 0x253   :  { %5507 = vmatpush1.bf16.msra.mxu1 %v6552_v12  ;;  %5509 = vmatprep.subr.bf16.mxu0 %v6295_v11  ;;  %v3473_v11 = vpop.permute.xlu0 %3472  ;;  %v5408_v12 = vld [vmem:[%s6855_s6 + $0x8] sm:$0xff] }
 0x254   :  { %5513 = vmatprep.subr.bf16.mxu1 %v6308_v30  ;;  %3387 = vmatprep.mubr.f32.mxu0 %v6919_v24 }
 0x255   :  { %3458 = vmatprep.mubr.f32.mxu1 %v6919_v24 }
 0x259   :  { %5406 = vmatmul.mubr.msk.f32.vlgmr.msra.gmra.mrb[2].mxu0 %vm114_vm0, %v5405_v2 }
 0x25a   :  { %5511 = vmatpush1.bf16.msra.mxu0 %v6305_v17  ;;  %5407 = vmatmul.mubr.msk.f32.vlgmr.msra.gmra.mrb[2].mxu1 %vm114_vm0, %v5405_v2  ;;  %v5185_v2 = vld [vmem:[%s6853_s9] sm:$0xff] }
 0x25b   :  { %5515 = vmatpush1.bf16.msra.mxu1 %v6311_v58  ;;  %3857 = vmatprep.mubr.f32.mxu1 %v6919_v24 }
 0x25c   :  { %3786 = vmatprep.mubr.f32.mxu0 %v6919_v24 }
 0x32c   :  { %v3389_v30 = vpop.f32.mrb[2].mxu0 }
 0x32d   :  { %v3475_v33 = vadd.f32 %v3473_v11, %v3389_v30  ;;  %v3391_v48 = vpop.f32.mrb[3].mxu0  ;;  %v3460_v0 = vpop.f32.mrb[2].mxu1 }
 0x32e   :  { %v3462_v4 = vpop.f32.mrb[3].mxu1  ;;  %v3477_v3 = vadd.f32 %v3473_v11, %v3460_v0  ;;  %v3476_v7 = vadd.f32 %v3473_v11, %v3391_v48 }
 0x32f   :  { %v6571_v42 = vmax.f32 %v3475_v33, 0.0  ;;  %v3478_v47 = vadd.f32 %v3473_v11, %v3462_v4  ;;  %v5150_v11 = vld [vmem:[%s6854_s7] sm:$0xff] }
 0x330   :  { %v6577_v58 = vmax.f32 %v3477_v3, 0.0  ;;  %v6581_v39 = vmax.f32 %v3476_v7, 0.0 }
 0x331   :  { %v6573_v17 = vmax.f32 %v3478_v47, 0.0  ;;  %3519 = vrot.lane.b32.xlu0 %v6571_v42, %s5709_s17 }
 0x333   :  { %3516 = vrot.lane.b32.xlu1 %v6573_v17, %s5709_s17 }
 0x335   :  { %3523 = vrot.lane.b32.xlu0 %v6577_v58, %s5709_s17 }
 0x337   :  { %3521 = vrot.lane.b32.xlu1 %v6581_v39, %s5709_s17 }
 0x339   :  { %3494 = vrot.lane.b32.xlu0 %v6571_v42, %s5710_s22 }
 0x33b   :  { %3488 = vrot.lane.b32.xlu1 %v6573_v17, %s5710_s22 }
 0x33d   :  { %3498 = vrot.lane.b32.xlu0 %v6577_v58, %s5710_s22 }
 0x33f   :  { %3496 = vrot.lane.b32.xlu1 %v6581_v39, %s5710_s22 }
 0x341   :  { %3544 = vrot.lane.b32.xlu0 %v6571_v42, %s5711_s23 }
 0x343   :  { %3541 = vrot.lane.b32.xlu1 %v6573_v17, %s5711_s23 }
 0x345   :  { %3548 = vrot.lane.b32.xlu0 %v6577_v58, %s5711_s23 }
 0x347   :  { %3546 = vrot.lane.b32.xlu1 %v6581_v39, %s5711_s23 }
 0x349   :  { %3569 = vrot.lane.b32.xlu0 %v6571_v42, %s5712_s24 }
 0x34b   :  { %3566 = vrot.lane.b32.xlu1 %v6573_v17, %s5712_s24 }
 0x34d   :  { %3573 = vrot.lane.b32.xlu0 %v6577_v58, %s5712_s24 }
 0x34f   :  { %3571 = vrot.lane.b32.xlu1 %v6581_v39, %s5712_s24 }
 0x351   :  { %3593 = vrot.lane.b32.xlu0 %v6581_v39, %s5713_s25 }
 0x353   :  { %3591 = vrot.lane.b32.xlu1 %v6571_v42, %s5713_s25 }
 0x355   :  { %3597 = vrot.lane.b32.xlu0 %v6573_v17, %s5713_s25 }
 0x357   :  { %3595 = vrot.lane.b32.xlu1 %v6577_v58, %s5713_s25 }
 0x359   :  { %3618 = vrot.lane.b32.xlu0 %v6581_v39, %s5714_s26 }
 0x35b   :  { %3616 = vrot.lane.b32.xlu1 %v6571_v42, %s5714_s26 }
 0x35d   :  { %3622 = vrot.lane.b32.xlu0 %v6573_v17, %s5714_s26 }
 0x35f   :  { %3620 = vrot.lane.b32.xlu1 %v6577_v58, %s5714_s26 }
 0x361   :  { %3643 = vrot.lane.b32.xlu0 %v6581_v39, %s5715_s27 }
 0x363   :  { %3641 = vrot.lane.b32.xlu1 %v6571_v42, %s5715_s27 }
 0x365   :  { %3647 = vrot.lane.b32.xlu0 %v6573_v17, %s5715_s27 }
 0x367   :  { %3645 = vrot.lane.b32.xlu1 %v6577_v58, %s5715_s27 }
 0x369   :  { %3668 = vrot.lane.b32.xlu0 %v6581_v39, %s5716_s28 }
 0x36b   :  { %3666 = vrot.lane.b32.xlu1 %v6571_v42, %s5716_s28 }
 0x36d   :  { %3672 = vrot.lane.b32.xlu0 %v6573_v17, %s5716_s28 }
 0x36f   :  { %3670 = vrot.lane.b32.xlu1 %v6577_v58, %s5716_s28 }
 0x371   :  { %5188 = vperm.xlu0 %5702, %v5185_v2   ;;  %v6960_v2 = vld [vmem:[#allocation3_spill] sm:$0xff] }
 0x373   :  { %5153 = vperm.xlu1 %5703, %v5150_v11  }
 0x3a3   :  { %v3520_v30 = vpop.permute.xlu0 %3519 }
 0x3a5   :  { %v3517_v33 = vpop.permute.xlu1 %3516 }
 0x3a6   :  { %v3532_v4 = vsel %vm114_vm0, %v3517_v33, %v3520_v30 }
 0x3a7   :  { %v3524_v48 = vpop.permute.xlu0 %3523 }
 0x3a8   :  { %v3527_v0 = vsel %vm114_vm0, %v3524_v48, %v3517_v33  ;;  %v3533_v33 = vmul.f32 %v3532_v4, %v5880_v18 }
 0x3a9   :  { %v3536_v3 = vmul.f32 %v3527_v0, %v5874_v16  ;;  %v3522_v47 = vpop.permute.xlu1 %3521 }
 0x3aa   :  { %v3525_v7 = vsel %vm114_vm0, %v3520_v30, %v3522_v47  ;;  %v3526_v10 = vsel %vm114_vm0, %v3522_v47, %v3524_v48 }
 0x3ab   :  { %v3534_v1 = vmul.f32 %v3525_v7, %v6960_v2  ;;  %v3535_v9 = vmul.f32 %v3526_v10, %v5883_v19  ;;  %3797 = vmatprep.subr.mxu1 %v3536_v3  ;;  %v3495_v11 = vpop.permute.xlu0 %3494 }
 0x3ad   :  { %3726 = vmatprep.subr.mxu0 %v3534_v1  ;;  %3798 = vmatpush1.msra.mxu1 %v3535_v9  ;;  %v3489_v16 = vpop.permute.xlu1 %3488 }
 0x3ae   :  { %3727 = vmatpush1.msra.mxu0 %v3533_v33  ;;  %5410 = vmatmul.mubr.msk.f32.vlgmr.msra.gmra.mrb[4].mxu1 %vm3718_vm9, %v5408_v12  ;;  %v3507_v10 = vsel %vm67_vm2, %v3489_v16, %v3495_v11 }
 0x3af   :  { %5521 = vmatprep.subr.bf16.mxu1 %v6342_v60  ;;  %v3499_v30 = vpop.permute.xlu0 %3498  ;;  %5409 = vmatmul.mubr.msk.f32.vlgmr.msra.gmra.mrb[4].mxu0 %vm3718_vm9, %v5408_v12 }
 0x3b0   :  { %v3502_v19 = vsel %vm67_vm2, %v3499_v30, %v3489_v16  ;;  %5517 = vmatprep.subr.bf16.mxu0 %v6327_v23  ;;  %5523 = vmatpush1.bf16.msra.mxu1 %v6339_v45 }
 0x3b1   :  { %v3511_v18 = vmul.f32 %v3502_v19, %v5914_v34  ;;  %5519 = vmatpush1.bf16.msra.mxu0 %v6324_v28  ;;  %v3497_v1 = vpop.permute.xlu1 %3496  ;;  %4002 = vmatprep.mubr.f32.mxu1 %v6919_v24  ;;  %v3691_v34 = vld [vmem:[%s6855_s6] sm:$0xff]  ;;  %v3508_v28 = vmul.f32 %v3507_v10, %v5923_v37 }
 0x3b2   :  { %v3500_v60 = vsel %vm67_vm2, %v3495_v11, %v3497_v1  ;;  %v3501_v9 = vsel %vm67_vm2, %v3497_v1, %v3499_v30  ;;  %3931 = vmatprep.mubr.f32.mxu0 %v6919_v24  ;;  %v5419_v10 = vld [vmem:[%s6855_s6 + $0x20] sm:$0xff] }
 0x3b3   :  { %v3509_v12 = vmul.f32 %v3500_v60, %v5917_v35  ;;  %v3510_v23 = vmul.f32 %v3501_v9, %v5920_v36  ;;  %v3545_v45 = vpop.permute.xlu0 %3544  ;;  %3942 = vmatprep.subr.mxu1 %v3511_v18 }
 0x3b5   :  { %3871 = vmatprep.subr.mxu0 %v3509_v12  ;;  %3943 = vmatpush1.msra.mxu1 %v3510_v23  ;;  %v3542_v48 = vpop.permute.xlu1 %3541 }
 0x3b6   :  { %3872 = vmatpush1.msra.mxu0 %v3508_v28  ;;  %5412 = vmatmul.mubr.msk.f32.vlgmr.msra.gmra.mrb[4].mxu1 %vm3718_vm9, %v3691_v34  ;;  %v3557_v36 = vsel %vm161_vm3, %v3542_v48, %v3545_v45  ;;  %v5422_v28 = vld [vmem:[%s6855_s6 + $0x28] sm:$0xff] }
 0x3b7   :  { %5529 = vmatprep.subr.bf16.mxu1 %v6373_v41  ;;  %v3549_v0 = vpop.permute.xlu0 %3548  ;;  %5411 = vmatmul.mubr.msk.f32.vlgmr.msra.gmra.mrb[4].mxu0 %vm3718_vm9, %v3691_v34 }
 0x3b8   :  { %v3552_v35 = vsel %vm161_vm3, %v3549_v0, %v3542_v48  ;;  %5525 = vmatprep.subr.bf16.mxu0 %v6358_v59  ;;  %5531 = vmatpush1.bf16.msra.mxu1 %v6370_v63 }
 0x3b9   :  { %v3561_v37 = vmul.f32 %v3552_v35, %v5956_v52  ;;  %5527 = vmatpush1.bf16.msra.mxu0 %v6355_v44  ;;  %v3547_v4 = vpop.permute.xlu1 %3546  ;;  %4161 = vmatprep.mubr.f32.mxu1 %v6919_v24  ;;  %v5413_v52 = vld [vmem:[%s6855_s6 + $0x10] sm:$0xff]  ;;  %v3558_v44 = vmul.f32 %v3557_v36, %v5965_v55 }
 0x3ba   :  { %v3550_v41 = vsel %vm161_vm3, %v3545_v45, %v3547_v4  ;;  %v3551_v3 = vsel %vm161_vm3, %v3547_v4, %v3549_v0  ;;  %4090 = vmatprep.mubr.f32.mxu0 %v6919_v24  ;;  %v6963_v0 = vld [vmem:[#allocation8_spill] sm:$0xff]  ;;  %v6964_v4 = vld [vmem:[#allocation7_spill] sm:$0xff] }
 0x3bb   :  { %v3559_v47 = vmul.f32 %v3550_v41, %v5959_v53  ;;  %v3560_v59 = vmul.f32 %v3551_v3, %v5962_v54  ;;  %v3570_v63 = vpop.permute.xlu0 %3569  ;;  %4101 = vmatprep.subr.mxu1 %v3561_v37 }
 0x3bd   :  { %4030 = vmatprep.subr.mxu0 %v3559_v47  ;;  %4102 = vmatpush1.msra.mxu1 %v3560_v59  ;;  %v3567_v7 = vpop.permute.xlu1 %3566  ;;  %v6965_v47 = vld [vmem:[#allocation11_spill] sm:$0xff] }
 0x3be   :  { %4031 = vmatpush1.msra.mxu0 %v3558_v44  ;;  %5415 = vmatmul.mubr.msk.f32.vlgmr.msra.gmra.mrb[4].mxu1 %vm3718_vm9, %v5413_v52  ;;  %v3582_v54 = vsel %vm208_vm4, %v3567_v7, %v3570_v63 }
 0x3bf   :  { %5537 = vmatprep.subr.bf16.mxu1 %v6409_v57  ;;  %v3574_v2 = vpop.permute.xlu0 %3573  ;;  %5414 = vmatmul.mubr.msk.f32.vlgmr.msra.gmra.mrb[4].mxu0 %vm3718_vm9, %v5413_v52  ;;  %v6967_v52 = vld [vmem:[#allocation9_spill] sm:$0xff] }
 0x3c0   :  { %v3577_v53 = vsel %vm208_vm4, %v3574_v2, %v3567_v7  ;;  %5533 = vmatprep.subr.bf16.mxu0 %v6389_v14  ;;  %5539 = vmatpush1.bf16.msra.mxu1 %v6405_v38 }
 0x3c1   :  { %v3586_v55 = vmul.f32 %v3577_v53, %v5998_v15  ;;  %5535 = vmatpush1.bf16.msra.mxu0 %v6386_v62  ;;  %v3572_v11 = vpop.permute.xlu1 %3571  ;;  %4324 = vmatprep.mubr.f32.mxu1 %v6919_v24  ;;  %v5416_v15 = vld [vmem:[%s6855_s6 + $0x18] sm:$0xff]  ;;  %v3583_v62 = vmul.f32 %v3582_v54, %v6007_v22  ;;  %v6968_v54 = vld [vmem:[#allocation12_spill] sm:$0xff] }
 0x3c2   :  { %v3575_v57 = vsel %vm208_vm4, %v3570_v63, %v3572_v11  ;;  %v3576_v33 = vsel %vm208_vm4, %v3572_v11, %v3574_v2  ;;  %4253 = vmatprep.mubr.f32.mxu0 %v6919_v24  ;;  %v5425_v2 = vld [vmem:[%s6855_s6 + $0x30] sm:$0xff] }
 0x3c3   :  { %v3584_v16 = vmul.f32 %v3575_v57, %v6001_v20  ;;  %v3585_v14 = vmul.f32 %v3576_v33, %v6004_v21  ;;  %v3594_v38 = vpop.permute.xlu0 %3593  ;;  %4264 = vmatprep.subr.mxu1 %v3586_v55  ;;  %v6969_v55 = vld [vmem:[#allocation6_spill] sm:$0xff]  ;;  %v6970_v57 = vld [vmem:[#allocation16_spill] sm:$0xff] }
 0x3c5   :  { %4193 = vmatprep.subr.mxu0 %v3584_v16  ;;  %4265 = vmatpush1.msra.mxu1 %v3585_v14  ;;  %v3592_v30 = vpop.permute.xlu1 %3591 }
 0x3c6   :  { %4194 = vmatpush1.msra.mxu0 %v3583_v62  ;;  %5418 = vmatmul.mubr.msk.f32.vlgmr.msra.gmra.mrb[4].mxu1 %vm3718_vm9, %v5416_v15  ;;  %v3599_v12 = vsel %vm258_vm5, %v3592_v30, %v3594_v38 }
 0x3c7   :  { %5545 = vmatprep.subr.bf16.mxu1 %v6417_v31  ;;  %v3598_v19 = vpop.permute.xlu0 %3597  ;;  %5417 = vmatmul.mubr.msk.f32.vlgmr.msra.gmra.mrb[4].mxu0 %vm3718_vm9, %v5416_v15 }
 0x3c8   :  { %5541 = vmatprep.subr.bf16.mxu0 %v6400_v40  ;;  %5547 = vmatpush1.bf16.msra.mxu1 %v6436_v27  ;;  %v3607_v21 = vsel %vm258_vm5, %v3598_v19, %v3592_v30  ;;  %v6972_v30 = vld [vmem:[#allocation18_spill] sm:$0xff] }
 0x3c9   :  { %5543 = vmatpush1.bf16.msra.mxu0 %v6426_v46  ;;  %4427 = vmatprep.subr.mxu1 %v6573_v17  ;;  %v3596_v20 = vpop.permute.xlu1 %3595  ;;  %v3611_v60 = vmul.f32 %v3607_v21, %v6043_v50  ;;  %v6973_v21 = vld [vmem:[#allocation17_spill] sm:$0xff] }
 0x3ca   :  { %4356 = vmatprep.subr.mxu0 %v6581_v39  ;;  %4487 = vmatprep.mubr.f32.mxu1 %v6919_v24  ;;  %v3600_v18 = vsel %vm258_vm5, %v3594_v38, %v3596_v20  ;;  %v3601_v9 = vsel %vm258_vm5, %v3596_v20, %v3598_v19  ;;  %v6971_v38 = vld [vmem:[#allocation15_spill] sm:$0xff] }
 0x3cb   :  { %v3619_v22 = vpop.permute.xlu0 %3618  ;;  %4416 = vmatprep.mubr.f32.mxu0 %v6919_v24  ;;  %v3609_v23 = vmul.f32 %v3600_v18, %v6040_v49  ;;  %v3610_v50 = vmul.f32 %v3601_v9, %v6049_v56  ;;  %v6962_v56 = vld [vmem:[#allocation5_spill] sm:$0xff]  ;;  %v6974_v9 = vld [vmem:[#allocation22_spill] sm:$0xff] }
 0x3cc   :  { %4428 = vmatpush1.msra.mxu1 %v6577_v58 }
 0x3cd   :  { %4357 = vmatpush1.msra.mxu0 %v6571_v42  ;;  %5553 = vmatprep.subr.bf16.mxu1 %v6446_v43  ;;  %v3617_v1 = vpop.permute.xlu1 %3616 }
 0x3ce   :  { %5549 = vmatprep.subr.bf16.mxu0 %v6429_v5  ;;  %5421 = vmatmul.mubr.msk.f32.vlgmr.msra.gmra.mrb[4].mxu1 %vm3718_vm9, %v5419_v10  ;;  %v6961_v5 = vld [vmem:[#allocation4_spill] sm:$0xff]  ;;  %v3624_v37 = vsel %vm305_vm6, %v3617_v1, %v3619_v22 }
 0x3cf   :  { %5555 = vmatpush1.bf16.msra.mxu1 %v6464_v29  ;;  %v3623_v45 = vpop.permute.xlu0 %3622  ;;  %5420 = vmatmul.mubr.msk.f32.vlgmr.msra.gmra.mrb[4].mxu0 %vm3718_vm9, %v5419_v10  ;;  %v3608_v34 = vmul.f32 %v3599_v12, %v6961_v5  ;;  %v3633_v44 = vmul.f32 %v3624_v37, %v6967_v52 }
 0x3d0   :  { %5551 = vmatpush1.bf16.msra.mxu0 %v6458_v13  ;;  %4590 = vmatprep.subr.mxu1 %v3611_v60  ;;  %v3632_v49 = vsel %vm305_vm6, %v3623_v45, %v3617_v1 }
 0x3d1   :  { %4519 = vmatprep.subr.mxu0 %v3609_v23  ;;  %v3621_v43 = vpop.permute.xlu1 %3620  ;;  %4650 = vmatprep.mubr.f32.mxu1 %v6919_v24  ;;  %v3636_v35 = vmul.f32 %v3632_v49, %v6963_v0  ;;  %v6975_v23 = vld [vmem:[#allocation14_spill] sm:$0xff] }
 0x3d2   :  { %4579 = vmatprep.mubr.f32.mxu0 %v6919_v24  ;;  %v3625_v13 = vsel %vm305_vm6, %v3619_v22, %v3621_v43  ;;  %v3626_v36 = vsel %vm305_vm6, %v3621_v43, %v3623_v45  ;;  %v6976_v45 = vld [vmem:[#allocation13_spill] sm:$0xff]  ;;  %v5431_v43 = vld [vmem:[%s6855_s6 + $0x40] sm:$0xff] }
 0x3d3   :  { %4591 = vmatpush1.msra.mxu1 %v3610_v50  ;;  %v3644_v29 = vpop.permute.xlu0 %3643  ;;  %v3634_v41 = vmul.f32 %v3625_v13, %v6964_v4  ;;  %v5184_v4 = vld [vmem:[%s6856_s8] sm:$0xff] }
 0x3d4   :  { %4520 = vmatpush1.msra.mxu0 %v3608_v34  ;;  %5561 = vmatprep.subr.bf16.mxu1 %v6477_v26  ;;  %v6966_v26 = vld [vmem:[#allocation10_spill] sm:$0xff] }
 0x3d5   :  { %5557 = vmatprep.subr.bf16.mxu0 %v6962_v56  ;;  %v3642_v48 = vpop.permute.xlu1 %3641  ;;  %v3635_v59 = vmul.f32 %v3626_v36, %v6966_v26 }
 0x3d6   :  { %5424 = vmatmul.mubr.msk.f32.vlgmr.msra.gmra.mrb[4].mxu1 %vm3718_vm9, %v5422_v28  ;;  %v3649_v14 = vsel %vm352_vm7, %v3642_v48, %v3644_v29 }
 0x3d7   :  { %5563 = vmatpush1.bf16.msra.mxu1 %v6495_v61  ;;  %v3648_v3 = vpop.permute.xlu0 %3647  ;;  %5423 = vmatmul.mubr.msk.f32.vlgmr.msra.gmra.mrb[4].mxu0 %vm3718_vm9, %v5422_v28  ;;  %v3658_v22 = vmul.f32 %v3649_v14, %v6973_v21 }
 0x3d8   :  { %5559 = vmatpush1.bf16.msra.mxu0 %v6965_v47  ;;  %4753 = vmatprep.subr.mxu1 %v3636_v35  ;;  %v3657_v7 = vsel %vm352_vm7, %v3648_v3, %v3642_v48 }
 0x3d9   :  { %4682 = vmatprep.subr.mxu0 %v3634_v41  ;;  %v3646_v63 = vpop.permute.xlu1 %3645  ;;  %4813 = vmatprep.mubr.f32.mxu1 %v6919_v24  ;;  %v3661_v33 = vmul.f32 %v3657_v7, %v6970_v57 }
 0x3da   :  { %4742 = vmatprep.mubr.f32.mxu0 %v6919_v24  ;;  %v3650_v53 = vsel %vm352_vm7, %v3644_v29, %v3646_v63  ;;  %v3651_v16 = vsel %vm352_vm7, %v3646_v63, %v3648_v3 }
 0x3db   :  { %4754 = vmatpush1.msra.mxu1 %v3635_v59  ;;  %v3669_v61 = vpop.permute.xlu0 %3668  ;;  %v3659_v15 = vmul.f32 %v3650_v53, %v6971_v38  ;;  %v3660_v19 = vmul.f32 %v3651_v16, %v6972_v30  ;;  %v5707_v53 = vld [vmem:[%s6847_s0 + $0x8] sm:$0xff] }
 0x3dc   :  { %4683 = vmatpush1.msra.mxu0 %v3633_v44  ;;  %5569 = vmatprep.subr.bf16.mxu1 %v6968_v54  ;;  %v5705_v44 = vld [vmem:[%s6847_s0] sm:$0xff] }
 0x3dd   :  { %5565 = vmatprep.subr.bf16.mxu0 %v6969_v55  ;;  %v3667_v11 = vpop.permute.xlu1 %3666 }
 0x3de   :  { %5427 = vmatmul.mubr.msk.f32.vlgmr.msra.gmra.mrb[4].mxu1 %vm3718_vm9, %v5425_v2  ;;  %v3674_v60 = vsel %vm399_vm8, %v3667_v11, %v3669_v61 }
 0x3df   :  { %5571 = vmatpush1.bf16.msra.mxu1 %v6526_v51  ;;  %5426 = vmatmul.mubr.msk.f32.vlgmr.msra.gmra.mrb[4].mxu0 %vm3718_vm9, %v5425_v2  ;;  %v3673_v62 = vpop.permute.xlu0 %3672  ;;  %v5428_v51 = vld [vmem:[%s6855_s6 + $0x38] sm:$0xff] }
 0x3e0   :  { %5567 = vmatpush1.bf16.msra.mxu0 %v6520_v25  ;;  %4916 = vmatprep.subr.mxu1 %v3661_v33  ;;  %v3682_v10 = vsel %vm399_vm8, %v3673_v62, %v3667_v11 }
 0x3e1   :  { %4845 = vmatprep.subr.mxu0 %v3659_v15  ;;  %v3671_v20 = vpop.permute.xlu1 %3670  ;;  %4976 = vmatprep.mubr.f32.mxu1 %v6919_v24  ;;  %v3686_v18 = vmul.f32 %v3682_v10, %v6952_v6 }
 0x3e2   :  { %4905 = vmatprep.mubr.f32.mxu0 %v6919_v24  ;;  %v3675_v25 = vsel %vm399_vm8, %v3669_v61, %v3671_v20  ;;  %v3676_v1 = vsel %vm399_vm8, %v3671_v20, %v3673_v62  ;;  %v5706_v61 = vld [vmem:[%s6847_s0 + $0x18] sm:$0xff] }
 0x3e3   :  { %4917 = vmatpush1.msra.mxu1 %v3660_v19  ;;  %v3684_v12 = vmul.f32 %v3675_v25, %v6974_v9 }
 0x3e4   :  { %4846 = vmatpush1.msra.mxu0 %v3658_v22  ;;  %5577 = vmatprep.subr.bf16.mxu1 %v6539_v8  ;;  %v6977_v8 = vld [vmem:[#allocation25_spill] sm:$0xff] }
 0x3e5   :  { %5573 = vmatprep.subr.bf16.mxu0 %v6523_v32  ;;  %v3685_v50 = vmul.f32 %v3676_v1, %v6977_v8  ;;  %v6978_v32 = vld [vmem:[#allocation24_spill] sm:$0xff] }
 0x3e6   :  { %5430 = vmatmul.mubr.msk.f32.vlgmr.msra.gmra.mrb[4].mxu1 %vm3718_vm9, %v5428_v51  ;;  %v3683_v6 = vmul.f32 %v3674_v60, %v6978_v32 }
 0x3e7   :  { %5579 = vmatpush1.bf16.msra.mxu1 %v6975_v23  ;;  %5429 = vmatmul.mubr.msk.f32.vlgmr.msra.gmra.mrb[4].mxu0 %vm3718_vm9, %v5428_v51 }
 0x3e8   :  { %5575 = vmatpush1.bf16.msra.mxu0 %v6976_v45  ;;  %5079 = vmatprep.subr.mxu1 %v3686_v18 }
 0x3e9   :  { %5008 = vmatprep.subr.mxu0 %v3684_v12  ;;  %5139 = vmatprep.mubr.f32.mxu1 %v6919_v24 }
 0x3ea   :  { %5068 = vmatprep.mubr.f32.mxu0 %v6919_v24 }
 0x3eb   :  { %5080 = vmatpush1.msra.mxu1 %v3685_v50 }
 0x3ec   :  { %5009 = vmatpush1.msra.mxu0 %v3683_v6  ;;  %5589 = vmatprep.subr.bf16.mxu1 %v6417_v31 }
 0x3ed   :  { %5581 = vmatprep.subr.bf16.mxu0 %v6400_v40 }
 0x3ee   :  { %5433 = vmatmul.mubr.msk.f32.vlgmr.msra.gmra.mrb[4].mxu1 %vm3718_vm9, %v5431_v43 }
 0x3ef   :  { %5591 = vmatpush1.bf16.msra.mxu1 %v6436_v27  ;;  %5432 = vmatmul.mubr.msk.f32.vlgmr.msra.gmra.mrb[4].mxu0 %vm3718_vm9, %v5431_v43 }
 0x3f0   :  { %5583 = vmatpush1.bf16.msra.mxu0 %v6426_v46  ;;  %5330 = vmatprep.mubr.f32.mxu1 %v6919_v24  ;;  %v5189_v41 = vpop.permute.xlu0 %5188 }
 0x3f1   :  { %5259 = vmatprep.mubr.f32.mxu0 %v6919_v24 }
 0x3f2   :  { %v5154_v5 = vpop.permute.xlu1 %5153 }
 0x4c1   :  { %v5141_v34 = vpop.f32.mrb[4].mxu1 }
 0x4c2   :  { %v5158_v49 = vadd.f32 %v5154_v5, %v5141_v34  ;;  %v5070_v29 = vpop.f32.mrb[4].mxu0  ;;  %v5143_v28 = vpop.f32.mrb[5].mxu1 }
 0x4c3   :  { %v5156_v31 = vadd.f32 %v5154_v5, %v5070_v29  ;;  %v5159_v13 = vadd.f32 %v5154_v5, %v5143_v28  ;;  %v5072_v40 = vpop.f32.mrb[5].mxu0 }
 0x4c4   :  { %v5162_v56 = vmax.f32 %v5158_v49, 0.0  ;;  %v5157_v48 = vadd.f32 %v5154_v5, %v5072_v40 }
 0x4c5   :  { %v5160_v0 = vmax.f32 %v5156_v31, 0.0  ;;  %v5163_v27 = vmax.f32 %v5159_v13, 0.0 }
 0x4c6   :  { %v5161_v35 = vmax.f32 %v5157_v48, 0.0  ;;  %v5594_v46 = vpack.c.bf16 %v5162_v56, %v6577_v58 }
 0x4c7   :  { %v5592_v36 = vpack.c.bf16 %v5163_v27, %v6573_v17  ;;  %v5586_v24 = vpack.c.bf16 %v5160_v0, %v6571_v42  ;;  %v5704_v42 = vld [vmem:[%s6847_s0 + $0x10] sm:$0xff] }
 0x4c8   :  { %v5584_v37 = vpack.c.bf16 %v5161_v35, %v6581_v39 }
 0x4c9   :  { %5593 = vmatprep.subr.bf16.mxu1 %v5592_v36 }
 0x4ca   :  { %5585 = vmatprep.subr.bf16.mxu0 %v5584_v37  ;;  %5595 = vmatpush1.bf16.msra.mxu1 %v5594_v46 }
 0x4cb   :  { %5587 = vmatpush1.bf16.msra.mxu0 %v5586_v24 }
 0x4cd   :  { %5435 = vmatmul.mubr.msk.f32.vlgmr.msra.gmra.mrb[6].mxu1 %vm5191_vm10, %v5184_v4 }
 0x4ce   :  { %5434 = vmatmul.mubr.msk.f32.vlgmr.msra.gmra.mrb[6].mxu0 %vm5191_vm10, %v5184_v4 }
 0x5a0   :  { %v5332_v3 = vpop.f32.mrb[6].mxu1 }
 0x5a1   :  { %v5333_v17 = vadd.f32 %v5332_v3, %v5189_v41  ;;  %v5261_v47 = vpop.f32.mrb[6].mxu0  ;;  %v5334_v58 = vpop.f32.mrb[7].mxu1 }
 0x5a2   :  { %v5262_v26 = vadd.f32 %v5261_v47, %v5189_v41  ;;  %v5335_v39 = vadd.f32 %v5334_v58, %v5189_v41  ;;  %v5263_v59 = vpop.f32.mrb[7].mxu0 }
 0x5a3   :  { %v5339_v63 = vadd.f32 %v5704_v42, %v5333_v17  ;;  %v5264_v52 = vadd.f32 %v5263_v59, %v5189_v41 }
 0x5a4   :  { %v5337_v7 = vadd.f32 %v5705_v44, %v5262_v26  ;;  %v5340_v2 = vadd.f32 %v5706_v61, %v5335_v39 }
 0x5a5   :  { %5343 = vst [vmem:[%s6857_s10 + $0x10] sm:$0xff] %v5339_v63  ;;  %v5338_v54 = vadd.f32 %v5707_v53, %v5264_v52 }
 0x5a6   :  { %5341 = vst [vmem:[%s6857_s10] sm:$0xff] %v5337_v7  ;;  %5344 = vst [vmem:[%s6857_s10 + $0x18] sm:$0xff] %v5340_v2 }
 0x5a7   :  { %5342 = vst [vmem:[%s6857_s10 + $0x8] sm:$0xff] %v5338_v54 }

</bundles_post_ra>
